<compile_context>
chip_gen: v7x
topology: tpu7x:2x2x1
jax: 0.10.0
libtpu: 0.0.40
codegen_flags: <defaults>
</compile_context>

<pallas_src>
import math
import functools

import jax
import jax.numpy as jnp
from jax.experimental import pallas as pl
from jax.experimental.pallas import tpu as pltpu

# -----------------------------------------------------------------------------
# Scaled-down config mirroring Config() in the reference
# (original: n_layer=12, n_head=12, n_embd=768, vocab=50257, block=1024,
#  lora rank=16 with lora_alpha=0.5*rank, projector Linear(1024, 768))
# -----------------------------------------------------------------------------
N_LAYER = 2
N_HEAD = 2
N_EMBD = 32
HEAD_DIM = N_EMBD // N_HEAD
VOCAB = 64
BLOCK_SIZE = 64
RANK = 4
LORA_SCALE = (0.5 * RANK) / RANK          # attn / mlp LoRA scaling = 0.5
LMHEAD_LORA_SCALE = 1.0 / RANK            # lm_head uses loralib default alpha=1
IMG_FEAT_DIM = 256                        # stands in for ViT feature dim 1024
IMG_SEQ_LEN = 4
BOS_TOKEN_ID = 5                          # stands in for 50256 in the tiny vocab
PADDING_IDX = -100
LN_EPS = 1e-5

# Exact-reciprocal toggle for softmax parity tests (review correctness note).
EXACT_SOFTMAX_RECIP = False

# TODO(synk): tokenizer.encode(prompt) is string processing with no Pallas
# equivalent; a fixed synthetic token id list is used instead.
IMAGE_PROMPT_TOKENS = [11, 22, 33, 44, 55, 2]


def _round_up(v, m):
    return (v + m - 1) // m * m


# -----------------------------------------------------------------------------
# In-kernel helpers (traced inside Pallas kernels; jnp/lax only)
# -----------------------------------------------------------------------------
def _ln(x, g, b):
    # LayerNorm in f32 (matches torch semantics)
    mu = jnp.mean(x, axis=-1, keepdims=True)
    var = jnp.mean((x - mu) ** 2, axis=-1, keepdims=True)
    return (x - mu) * jax.lax.rsqrt(var + LN_EPS) * g + b


def _mm(a, b):
    # bf16 MXU operands (no-op cast if already bf16), f32 accumulation
    return jnp.dot(a.astype(jnp.bfloat16), b.astype(jnp.bfloat16),
                   preferred_element_type=jnp.float32)


def _gelu_tanh(y):
    c = math.sqrt(2.0 / math.pi)
    return 0.5 * y * (1.0 + jnp.tanh(c * (y + 0.044715 * y * y * y)))


# -----------------------------------------------------------------------------
# The single fused decoder kernel:
#   grid = (n_layer,); per step: LN1 -> qkv -> causal MHA -> proj -> residual
#   -> LN2 -> fc -> tanh-GELU -> mlp_proj -> residual ; last step additionally
#   does LayerNorm_f + tied lm_head and writes the (lane-padded) logits.
# -----------------------------------------------------------------------------
def _decoder_kernel(x_hbm, mask_ref, ln1g_ref, ln1b_ref, wqkv_ref, bqkv_ref,
                    wproj_ref, bproj_ref, ln2g_ref, ln2b_ref,
                    wfc_ref, bfc_ref, wmp_ref, bmp_ref,
                    lnfg_ref, lnfb_ref, wlm_ref,
                    o_ref, acc_ref, copy_sem, *, n_head):
    layer = pl.program_id(0)

    @pl.when(layer == 0)
    def _():
        # Embedded tokens fetched ONCE (pl.ANY input -> manual DMA into the
        # resident VMEM accumulator), not re-streamed every layer step.
        cp = pltpu.make_async_copy(x_hbm, acc_ref, copy_sem)
        cp.start()
        cp.wait()

    x = acc_ref[...]                               # (M, D) f32, M = B*T_pad
    m, d = x.shape
    hd = d // n_head
    scale = 1.0 / math.sqrt(hd)
    mask = mask_ref[...]                           # additive f32 bias (0/-1e30)

    # ---- attention sub-layer: LN1 -> (LoRA-folded, bf16) qkv -> causal MHA
    h = _ln(x, ln1g_ref[0], ln1b_ref[0])
    qkv = _mm(h, wqkv_ref[0]) + bqkv_ref[0]        # (M, 3D) f32
    wproj = wproj_ref[0]                           # (D, D) bf16

    attn_y = jnp.zeros((m, d), jnp.float32)
    for hh in range(n_head):                       # static unroll (n_head small)
        lo, hi = hh * hd, (hh + 1) * hd
        qh = qkv[:, lo:hi]
        kh = qkv[:, d + lo:d + hi]
        vh = qkv[:, 2 * d + lo:2 * d + hi]
        att = jax.lax.dot_general(                 # qh @ kh^T, f32 accumulate
            qh.astype(jnp.bfloat16), kh.astype(jnp.bfloat16),
            dimension_numbers=(((1,), (1,)), ((), ())),
            preferred_element_type=jnp.float32) * scale + mask
        att = att - jnp.max(att, axis=-1, keepdims=True)
        p = jnp.exp(att)
        denom = jnp.sum(p, axis=-1, keepdims=True)
        if EXACT_SOFTMAX_RECIP:
            p = p / denom
        else:
            p = p * pl.reciprocal(denom, approx=True)
        head = _mm(p, vh)                          # (M, hd)
        # head-merge + c_proj without any concat:
        # concat(heads) @ Wp == sum_h head_h @ Wp[h*hd:(h+1)*hd, :]
        attn_y = attn_y + _mm(head, wproj[lo:hi, :])
    x = x + attn_y + bproj_ref[0]                  # residual 1

    # ---- MLP sub-layer: LN2 -> (LoRA-folded, bf16) fc -> tanh-GELU -> proj
    h2 = _ln(x, ln2g_ref[0], ln2b_ref[0])
    fc = _gelu_tanh(_mm(h2, wfc_ref[0]) + bfc_ref[0])
    x = x + _mm(fc, wmp_ref[0]) + bmp_ref[0]       # residual 2

    acc_ref[...] = x

    @pl.when(layer == pl.num_programs(0) - 1)
    def _():
        # fused final LayerNorm + tied lm_head (LoRA folded, bias-free,
        # vocab lane-padded -> unmasked lane-dense store)
        hf = _ln(x, lnfg_ref[...], lnfb_ref[...])
        o_ref[...] = _mm(hf, wlm_ref[...])


def decoder_stack(x_flat, mask_bias, stacked, lnf_g, lnf_b, w_lm):
    m, d = x_flat.shape
    n_layers = stacked["wqkv"].shape[0]
    v_pad = w_lm.shape[1]

    def lspec(shape):
        # layer-stacked param: block (1, *shape) indexed by the layer axis
        return pl.BlockSpec((1,) + shape,
                            lambda li, _n=len(shape): (li,) + (0,) * _n)

    def cspec(shape):
        # constant block index across the layer axis -> fetched once / resident
        return pl.BlockSpec(shape, lambda li, _n=len(shape): (0,) * _n)

    return pl.pallas_call(
        functools.partial(_decoder_kernel, n_head=N_HEAD),
        out_shape=jax.ShapeDtypeStruct((m, v_pad), jnp.float32),
        grid=(n_layers,),
        in_specs=[
            pl.BlockSpec(memory_space=pl.ANY),        # embedded tokens (DMA once)
            cspec((m, m)),                            # additive causal mask
            lspec((1, d)), lspec((1, d)),             # ln1 gamma, beta
            lspec((d, 3 * d)), lspec((1, 3 * d)),     # qkv (bf16, LoRA folded), bias
            lspec((d, d)), lspec((1, d)),             # attn proj (bf16), bias
            lspec((1, d)), lspec((1, d)),             # ln2 gamma, beta
            lspec((d, 4 * d)), lspec((1, 4 * d)),     # fc (bf16), bias
            lspec((4 * d, d)), lspec((1, d)),         # mlp proj (bf16), bias
            cspec((1, d)), cspec((1, d)),             # final LN gamma, beta
            cspec((d, v_pad)),                        # lm_head weight (bf16)
        ],
        out_specs=cspec((m, v_pad)),
        scratch_shapes=[pltpu.VMEM((m, d), jnp.float32),   # resident activation
                        pltpu.SemaphoreType.DMA],          # layer-0 input copy
        compiler_params=pltpu.CompilerParams(
            dimension_semantics=("arbitrary",),
            vmem_limit_bytes=48 * 1024 * 1024),       # explicit budget (v7x: 64 MiB phys)
    )(x_flat, mask_bias,
      stacked["ln1_g"], stacked["ln1_b"], stacked["wqkv"], stacked["bqkv"],
      stacked["wproj"], stacked["bproj"], stacked["ln2_g"], stacked["ln2_b"],
      stacked["wfc"], stacked["bfc"], stacked["wmp"], stacked["bmp"],
      lnf_g, lnf_b, w_lm)


# -----------------------------------------------------------------------------
# Model pieces (matching the torch module structure)
# -----------------------------------------------------------------------------
def _fold_lora(w, la, lb, scale):
    # loralib.Linear forward: x@W + b + scale*(x@A^T)@B^T == x@(W + scale*A@B) + b
    return w + scale * (la @ lb)


def _stack_block_params(blocks):
    def stk(fn, dtype=None):
        arr = jnp.stack([fn(p) for p in blocks], axis=0)
        return arr if dtype is None else arr.astype(dtype)
    bf16 = jnp.bfloat16
    return {
        "ln1_g": stk(lambda p: p["ln1_g"].reshape(1, -1)),
        "ln1_b": stk(lambda p: p["ln1_b"].reshape(1, -1)),
        # matmul weights: LoRA folded in f32, shipped as bf16 (half the DMA bytes)
        "wqkv": stk(lambda p: _fold_lora(p["c_attn_w"], p["c_attn_la"],
                                         p["c_attn_lb"], LORA_SCALE), bf16),
        "bqkv": stk(lambda p: p["c_attn_b"].reshape(1, -1)),
        "wproj": stk(lambda p: _fold_lora(p["c_proj_w"], p["c_proj_la"],
                                          p["c_proj_lb"], LORA_SCALE), bf16),
        "bproj": stk(lambda p: p["c_proj_b"].reshape(1, -1)),
        "ln2_g": stk(lambda p: p["ln2_g"].reshape(1, -1)),
        "ln2_b": stk(lambda p: p["ln2_b"].reshape(1, -1)),
        "wfc": stk(lambda p: _fold_lora(p["c_fc_w"], p["c_fc_la"],
                                        p["c_fc_lb"], LORA_SCALE), bf16),
        "bfc": stk(lambda p: p["c_fc_b"].reshape(1, -1)),
        "wmp": stk(lambda p: _fold_lora(p["mlp_proj_w"], p["mlp_proj_la"],
                                        p["mlp_proj_lb"], LORA_SCALE), bf16),
        "bmp": stk(lambda p: p["mlp_proj_b"].reshape(1, -1)),
    }


def decoder_forward(params, token_ids, image_features, max_len):
    token_ids = token_ids[:, :BLOCK_SIZE]                    # torch.narrow
    b, t_txt = token_ids.shape
    pos = jnp.arange(t_txt, dtype=jnp.int32)
    x = jnp.take(params["wte"], token_ids, axis=0) \
        + jnp.take(params["wpe"], pos, axis=0)[None, :, :]
    x = jnp.concatenate([image_features, x], axis=1)         # (B, T_real, D)

    t_real = x.shape[1]
    t_pad = _round_up(t_real, 8)                             # sublane-dense rows
    if t_pad != t_real:
        # zero rows appended at the END: causal mask keeps them inert; sliced off
        x = jnp.pad(x, ((0, 0), (0, t_pad - t_real), (0, 0)))

    # Additive block-diagonal causal mask over the flattened (B*T_pad) rows,
    # built ONCE here (0 for allowed, -1e30 for masked, kept in f32).
    m = b * t_pad
    r = jnp.arange(m, dtype=jnp.int32)
    same_batch = (r[:, None] // t_pad) == (r[None, :] // t_pad)
    causal = (r[None, :] % t_pad) <= (r[:, None] % t_pad)
    mask_bias = jnp.where(same_batch & causal, 0.0, -1e30).astype(jnp.float32)

    stacked = _stack_block_params(params["blocks"])

    # lm_head: lora.Linear(n_embd, vocab, r=rank, bias=False), weight tied to
    # wte; fold LoRA, lane-pad vocab to a multiple of 128, ship as bf16.
    w_lm = _fold_lora(params["wte"].T, params["lm_la"], params["lm_lb"],
                      LMHEAD_LORA_SCALE)
    v_pad = _round_up(VOCAB, 128)
    w_lm = jnp.pad(w_lm, ((0, 0), (0, v_pad - VOCAB))).astype(jnp.bfloat16)

    logits = decoder_stack(x.reshape(m, N_EMBD), mask_bias, stacked,
                           params["lnf_g"].reshape(1, -1),
                           params["lnf_b"].reshape(1, -1), w_lm)
    logits = logits.reshape(b, t_pad, v_pad)
    # reference: x = x[:, -max_len:, :] before lm_head; same values for kept rows
    return logits[:, t_real - max_len:t_real, :VOCAB]


def vit_forward_features(images):
    # TODO(synk): the external ViT encoder (vit_encoder_model.forward_features)
    # is mocked with a deterministic patchify; it is not part of this module.
    b, c, h, w = images.shape
    ph, pw = h // 2, w // 2
    patches = images.reshape(b, c, 2, ph, 2, pw)
    patches = patches.transpose(0, 2, 4, 1, 3, 5).reshape(b, 4, c * ph * pw)
    return patches                                           # (B, 4, 256)


def _pad_text_tokens(tokens, max_len, pad_token):
    return tokens + [pad_token] * (max_len - len(tokens))


def prepare_tokens(captions_enc):
    # TODO(synk): tokenizer.encode(caption) has no Pallas equivalent; callers
    # pass pre-encoded synthetic token-id lists.
    text_tokens, target_tokens = [], []
    for cap in captions_enc:
        cap = list(cap)
        if cap[0] != BOS_TOKEN_ID:
            cap = [BOS_TOKEN_ID] + cap
        if cap[-1] != BOS_TOKEN_ID:
            cap = cap + [BOS_TOKEN_ID]
        text_tokens.append(cap[:-1])
        target_tokens.append(cap[1:])
    max_len = max(len(t) for t in text_tokens)
    text = [IMAGE_PROMPT_TOKENS + _pad_text_tokens(t, max_len, BOS_TOKEN_ID)
            for t in text_tokens]
    targ = [_pad_text_tokens(t, max_len, PADDING_IDX) for t in target_tokens]
    return (jnp.asarray(text, jnp.int32), jnp.asarray(targ, jnp.int32), max_len)


@functools.partial(jax.jit, static_argnames=("max_len",))
def model_forward(params, images, text_tokens, *, max_len):
    image_features = vit_forward_features(images)
    # Projector (nn.Linear(1024->768), here 256->32): tiny (B*4,256)@(256,32)
    # matmul; per perf review this stays in plain jnp (fused by XLA into the
    # embedding prologue) instead of a dedicated pallas_call at these shapes.
    image_features = image_features @ params["proj_w"] + params["proj_b"]
    return decoder_forward(params, text_tokens, image_features, max_len)


def image_captioning_forward(params, images, captions_enc):
    """ImageCaptioningModel.forward(..., mode='train')."""
    text_tokens, target_tokens, max_len = prepare_tokens(captions_enc)
    outputs = model_forward(params, images, text_tokens, max_len=max_len)
    return outputs, target_tokens


# -----------------------------------------------------------------------------
# Deterministic parameter init (shapes follow the torch module __init__)
# -----------------------------------------------------------------------------
def init_params(key):
    keys = iter(jax.random.split(key, 256))

    def nrm(shape, s=0.02):
        return s * jax.random.normal(next(keys), shape, jnp.float32)

    def lora_layer(din, dout):
        # NOTE: loralib zero-inits lora_B; small nonzero values are used here so
        # the folded LoRA path is actually exercised.
        return dict(w=nrm((din, dout)), b=jnp.zeros((dout,), jnp.float32),
                    la=nrm((din, RANK), 0.1), lb=nrm((RANK, dout), 0.1))

    params = {
        "wte": nrm((VOCAB, N_EMBD)),                 # tied with lm_head.weight
        "wpe": nrm((BLOCK_SIZE, N_EMBD)),
        "proj_w": nrm((IMG_FEAT_DIM, N_EMBD)),       # projector nn.Linear
        "proj_b": jnp.zeros((N_EMBD,), jnp.float32),
        "lnf_g": jnp.ones((N_EMBD,), jnp.float32),
        "lnf_b": jnp.zeros((N_EMBD,), jnp.float32),
        "lm_la": nrm((N_EMBD, RANK), 0.1),
        "lm_lb": nrm((RANK, VOCAB), 0.1),
        "blocks": [],
    }
    for _ in range(N_LAYER):
        attn_qkv = lora_layer(N_EMBD, 3 * N_EMBD)
        attn_proj = lora_layer(N_EMBD, N_EMBD)
        fc = lora_layer(N_EMBD, 4 * N_EMBD)
        mp = lora_layer(4 * N_EMBD, N_EMBD)
        params["blocks"].append({
            "ln1_g": jnp.ones((N_EMBD,), jnp.float32),
            "ln1_b": jnp.zeros((N_EMBD,), jnp.float32),
            "ln2_g": jnp.ones((N_EMBD,), jnp.float32),
            "ln2_b": jnp.zeros((N_EMBD,), jnp.float32),
            "c_attn_w": attn_qkv["w"], "c_attn_b": attn_qkv["b"],
            "c_attn_la": attn_qkv["la"], "c_attn_lb": attn_qkv["lb"],
            "c_proj_w": attn_proj["w"], "c_proj_b": attn_proj["b"],
            "c_proj_la": attn_proj["la"], "c_proj_lb": attn_proj["lb"],
            "c_fc_w": fc["w"], "c_fc_b": fc["b"],
            "c_fc_la": fc["la"], "c_fc_lb": fc["lb"],
            "mlp_proj_w": mp["w"], "mlp_proj_b": mp["b"],
            "mlp_proj_la": mp["la"], "mlp_proj_lb": mp["lb"],
        })
    return params


# -----------------------------------------------------------------------------
if __name__ == "__main__":
    root = jax.random.PRNGKey(0)
    k_params, k_img = jax.random.split(root)
    params = init_params(k_params)

    # layout: images NCHW (batch=2, channels=4, H=W=16), like PyTorch conv input
    images = jax.random.normal(k_img, (2, 4, 16, 16), dtype=jnp.float32)

    # synthetic pre-encoded captions (stand-in for tokenizer.encode output)
    captions_enc = [[7, 9, 12], [3, 8, 14, 21]]

    outputs, target_tokens = image_captioning_forward(params, images, captions_enc)
    jax.block_until_ready(outputs)
    jax.block_until_ready(target_tokens)

    # expected: outputs (B, max_len, vocab) = (2, 5, 64), targets (2, 5)
    assert outputs.shape == (2, 5, VOCAB), outputs.shape
    assert target_tokens.shape == (2, 5), target_tokens.shape
    assert bool(jnp.all(jnp.isfinite(outputs)))

    print("KERNEL_OK")
</pallas_src>

<mosaic_0001>
module attributes {stable_mosaic.version = 11 : i64} {
  func.func @_decoder_kernel(%arg0: i32, %arg1: memref<32x32xf32, #tpu.memory_space<any>>, %arg2: memref<32x32xf32, #tpu.memory_space<vmem>>, %arg3: memref<1x1x32xf32, #tpu.memory_space<vmem>>, %arg4: memref<1x1x32xf32, #tpu.memory_space<vmem>>, %arg5: memref<1x32x96xbf16, #tpu.memory_space<vmem>>, %arg6: memref<1x1x96xf32, #tpu.memory_space<vmem>>, %arg7: memref<1x32x32xbf16, #tpu.memory_space<vmem>>, %arg8: memref<1x1x32xf32, #tpu.memory_space<vmem>>, %arg9: memref<1x1x32xf32, #tpu.memory_space<vmem>>, %arg10: memref<1x1x32xf32, #tpu.memory_space<vmem>>, %arg11: memref<1x32x128xbf16, #tpu.memory_space<vmem>>, %arg12: memref<1x1x128xf32, #tpu.memory_space<vmem>>, %arg13: memref<1x128x32xbf16, #tpu.memory_space<vmem>>, %arg14: memref<1x1x32xf32, #tpu.memory_space<vmem>>, %arg15: memref<1x32xf32, #tpu.memory_space<vmem>>, %arg16: memref<1x32xf32, #tpu.memory_space<vmem>>, %arg17: memref<32x128xbf16, #tpu.memory_space<vmem>>, %arg18: memref<32x128xf32, #tpu.memory_space<vmem>>, %arg19: memref<32x32xf32, #tpu.memory_space<vmem>>, %arg20: memref<!tpu.dma_semaphore, #tpu.memory_space<semaphore_mem>>) attributes {dimension_semantics = [#tpu.dimension_semantics<arbitrary>], iteration_bounds = array<i64: 2>, scalar_prefetch = 0 : i64, scratch_operands = 2 : i64, tpu.core_type = #tpu.core_type<tc>, window_params = [{}, {pipeline_mode = #tpu.pipeline_mode<synchronous>, transform_indices = @transform_1, window_bounds = array<i64: 32, 32>}, {transform_indices = @transform_2, window_bounds = array<i64: 1, 1, 32>}, {transform_indices = @transform_3, window_bounds = array<i64: 1, 1, 32>}, {transform_indices = @transform_4, window_bounds = array<i64: 1, 32, 96>}, {transform_indices = @transform_5, window_bounds = array<i64: 1, 1, 96>}, {transform_indices = @transform_6, window_bounds = array<i64: 1, 32, 32>}, {transform_indices = @transform_7, window_bounds = array<i64: 1, 1, 32>}, {transform_indices = @transform_8, window_bounds = array<i64: 1, 1, 32>}, {transform_indices = @transform_9, window_bounds = array<i64: 1, 1, 32>}, {transform_indices = @transform_10, window_bounds = array<i64: 1, 32, 128>}, {transform_indices = @transform_11, window_bounds = array<i64: 1, 1, 128>}, {transform_indices = @transform_12, window_bounds = array<i64: 1, 128, 32>}, {transform_indices = @transform_13, window_bounds = array<i64: 1, 1, 32>}, {pipeline_mode = #tpu.pipeline_mode<synchronous>, transform_indices = @transform_14, window_bounds = array<i64: 1, 32>}, {pipeline_mode = #tpu.pipeline_mode<synchronous>, transform_indices = @transform_15, window_bounds = array<i64: 1, 32>}, {pipeline_mode = #tpu.pipeline_mode<synchronous>, transform_indices = @transform_16, window_bounds = array<i64: 32, 128>}, {pipeline_mode = #tpu.pipeline_mode<synchronous>, transform_indices = @transform_17, window_bounds = array<i64: 32, 128>}]} {
    %c0_i32 = arith.constant 0 : i32
    %0 = arith.cmpi eq, %arg0, %c0_i32 : i32
    %1 = arith.extui %0 : i1 to i32
    %c0_i32_0 = arith.constant 0 : i32
    %2 = arith.cmpi ne, %1, %c0_i32_0 : i32
    scf.if %2 {
      tpu.enqueue_dma source(%arg1 : memref<32x32xf32, #tpu.memory_space<any>>) target(%arg19 : memref<32x32xf32, #tpu.memory_space<vmem>>) target_semaphore(%arg20 : memref<!tpu.dma_semaphore, #tpu.memory_space<semaphore_mem>>)
      tpu.wait_dma2 semaphore(%arg20 : memref<!tpu.dma_semaphore, #tpu.memory_space<semaphore_mem>>) src(%arg1 : memref<32x32xf32, #tpu.memory_space<any>>) dst(%arg19 : memref<32x32xf32, #tpu.memory_space<vmem>>)
    } else {
    }
    %c0 = arith.constant 0 : index
    %c0_1 = arith.constant 0 : index
    %3 = vector.load %arg19[%c0, %c0_1] : memref<32x32xf32, #tpu.memory_space<vmem>>, vector<32x32xf32>
    %c0_2 = arith.constant 0 : index
    %c0_3 = arith.constant 0 : index
    %4 = vector.load %arg2[%c0_2, %c0_3] : memref<32x32xf32, #tpu.memory_space<vmem>>, vector<32x32xf32>
    %c0_4 = arith.constant 0 : index
    %c0_5 = arith.constant 0 : index
    %c0_6 = arith.constant 0 : index
    %5 = vector.load %arg3[%c0_4, %c0_5, %c0_6] : memref<1x1x32xf32, #tpu.memory_space<vmem>>, vector<1x1x32xf32>
    %6 = vector.shape_cast %5 : vector<1x1x32xf32> to vector<1x32xf32>
    %c0_7 = arith.constant 0 : index
    %c0_8 = arith.constant 0 : index
    %c0_9 = arith.constant 0 : index
    %7 = vector.load %arg4[%c0_7, %c0_8, %c0_9] : memref<1x1x32xf32, #tpu.memory_space<vmem>>, vector<1x1x32xf32>
    %8 = vector.shape_cast %7 : vector<1x1x32xf32> to vector<1x32xf32>
    %cst = arith.constant dense<0.000000e+00> : vector<32xf32>
    %9 = vector.multi_reduction <add>, %3, %cst [1] : vector<32x32xf32> to vector<32xf32>
    %10 = vector.shape_cast %9 : vector<32xf32> to vector<32x1xf32>
    %cst_10 = arith.constant 3.200000e+01 : f32
    %11 = vector.broadcast %cst_10 : f32 to vector<32x1xf32>
    %12 = arith.divf %10, %11 : vector<32x1xf32>
    %13 = vector.broadcast %12 : vector<32x1xf32> to vector<32x32xf32>
    %14 = arith.subf %3, %13 : vector<32x32xf32>
    %15 = arith.mulf %14, %14 : vector<32x32xf32>
    %cst_11 = arith.constant dense<0.000000e+00> : vector<32xf32>
    %16 = vector.multi_reduction <add>, %15, %cst_11 [1] : vector<32x32xf32> to vector<32xf32>
    %17 = vector.shape_cast %16 : vector<32xf32> to vector<32x1xf32>
    %cst_12 = arith.constant 3.200000e+01 : f32
    %18 = vector.broadcast %cst_12 : f32 to vector<32x1xf32>
    %19 = arith.divf %17, %18 : vector<32x1xf32>
    %20 = vector.broadcast %12 : vector<32x1xf32> to vector<32x32xf32>
    %21 = arith.subf %3, %20 : vector<32x32xf32>
    %cst_13 = arith.constant 9.99999974E-6 : f32
    %22 = vector.broadcast %cst_13 : f32 to vector<32x1xf32>
    %23 = arith.addf %19, %22 : vector<32x1xf32>
    %24 = math.rsqrt %23 : vector<32x1xf32>
    %25 = vector.broadcast %24 : vector<32x1xf32> to vector<32x32xf32>
    %26 = arith.mulf %21, %25 : vector<32x32xf32>
    %27 = vector.broadcast %6 : vector<1x32xf32> to vector<32x32xf32>
    %28 = arith.mulf %26, %27 : vector<32x32xf32>
    %29 = vector.broadcast %8 : vector<1x32xf32> to vector<32x32xf32>
    %30 = arith.addf %28, %29 : vector<32x32xf32>
    %c0_14 = arith.constant 0 : index
    %c0_15 = arith.constant 0 : index
    %c0_16 = arith.constant 0 : index
    %31 = vector.load %arg5[%c0_14, %c0_15, %c0_16] : memref<1x32x96xbf16, #tpu.memory_space<vmem>>, vector<1x32x96xbf16>
    %32 = vector.shape_cast %31 : vector<1x32x96xbf16> to vector<32x96xbf16>
    %33 = arith.truncf %30 : vector<32x32xf32> to vector<32x32xbf16>
    %cst_17 = arith.constant dense<0.000000e+00> : vector<32x96xf32>
    %34 = tpu.matmul %33, %32, %cst_17 {dimension_numbers = #tpu.dot_dimension_numbers<[1], [0], [0], [1], [0, 0, 1, 1], [], []>} : vector<32x32xbf16>, vector<32x96xbf16>, vector<32x96xf32> -> vector<32x96xf32>
    %c0_18 = arith.constant 0 : index
    %c0_19 = arith.constant 0 : index
    %c0_20 = arith.constant 0 : index
    %35 = vector.load %arg6[%c0_18, %c0_19, %c0_20] : memref<1x1x96xf32, #tpu.memory_space<vmem>>, vector<1x1x96xf32>
    %36 = vector.shape_cast %35 : vector<1x1x96xf32> to vector<1x96xf32>
    %37 = vector.broadcast %36 : vector<1x96xf32> to vector<32x96xf32>
    %38 = arith.addf %34, %37 : vector<32x96xf32>
    %c0_21 = arith.constant 0 : index
    %c0_22 = arith.constant 0 : index
    %c0_23 = arith.constant 0 : index
    %39 = vector.load %arg7[%c0_21, %c0_22, %c0_23] : memref<1x32x32xbf16, #tpu.memory_space<vmem>>, vector<1x32x32xbf16>
    %40 = vector.shape_cast %39 : vector<1x32x32xbf16> to vector<32x32xbf16>
    %cst_24 = arith.constant 0.000000e+00 : f32
    %41 = vector.broadcast %cst_24 : f32 to vector<32x32xf32>
    %42 = vector.extract_strided_slice %38 {offsets = [0, 0], sizes = [32, 16], strides = [1, 1]} : vector<32x96xf32> to vector<32x16xf32>
    %43 = vector.extract_strided_slice %38 {offsets = [0, 32], sizes = [32, 16], strides = [1, 1]} : vector<32x96xf32> to vector<32x16xf32>
    %44 = vector.extract_strided_slice %38 {offsets = [0, 64], sizes = [32, 16], strides = [1, 1]} : vector<32x96xf32> to vector<32x16xf32>
    %45 = arith.truncf %42 : vector<32x16xf32> to vector<32x16xbf16>
    %46 = arith.truncf %43 : vector<32x16xf32> to vector<32x16xbf16>
    %cst_25 = arith.constant dense<0.000000e+00> : vector<32x32xf32>
    %47 = tpu.matmul %45, %46, %cst_25 {dimension_numbers = #tpu.dot_dimension_numbers<[1], [1], [0], [0], [0, 0, 1, 0], [], []>} : vector<32x16xbf16>, vector<32x16xbf16>, vector<32x32xf32> -> vector<32x32xf32>
    %cst_26 = arith.constant 2.500000e-01 : f32
    %48 = vector.broadcast %cst_26 : f32 to vector<32x32xf32>
    %49 = arith.mulf %47, %48 : vector<32x32xf32>
    %50 = arith.addf %49, %4 : vector<32x32xf32>
    %cst_27 = arith.constant dense<0xFF800000> : vector<32xf32>
    %51 = vector.multi_reduction <maximumf>, %50, %cst_27 [1] : vector<32x32xf32> to vector<32xf32>
    %52 = vector.shape_cast %51 : vector<32xf32> to vector<32x1xf32>
    %53 = vector.broadcast %52 : vector<32x1xf32> to vector<32x32xf32>
    %54 = arith.subf %50, %53 : vector<32x32xf32>
    %55 = math.exp %54 : vector<32x32xf32>
    %cst_28 = arith.constant dense<0.000000e+00> : vector<32xf32>
    %56 = vector.multi_reduction <add>, %55, %cst_28 [1] : vector<32x32xf32> to vector<32xf32>
    %57 = vector.shape_cast %56 : vector<32xf32> to vector<32x1xf32>
    %58 = tpu.reciprocal %57 {approx = true} : vector<32x1xf32> -> vector<32x1xf32>
    %59 = vector.broadcast %58 : vector<32x1xf32> to vector<32x32xf32>
    %60 = arith.mulf %55, %59 : vector<32x32xf32>
    %61 = arith.truncf %60 : vector<32x32xf32> to vector<32x32xbf16>
    %62 = arith.truncf %44 : vector<32x16xf32> to vector<32x16xbf16>
    %cst_29 = arith.constant dense<0.000000e+00> : vector<32x16xf32>
    %63 = tpu.matmul %61, %62, %cst_29 {dimension_numbers = #tpu.dot_dimension_numbers<[1], [0], [0], [1], [0, 0, 1, 1], [], []>} : vector<32x32xbf16>, vector<32x16xbf16>, vector<32x16xf32> -> vector<32x16xf32>
    %64 = vector.extract_strided_slice %40 {offsets = [0, 0], sizes = [16, 32], strides = [1, 1]} : vector<32x32xbf16> to vector<16x32xbf16>
    %65 = arith.truncf %63 : vector<32x16xf32> to vector<32x16xbf16>
    %cst_30 = arith.constant dense<0.000000e+00> : vector<32x32xf32>
    %66 = tpu.matmul %65, %64, %cst_30 {dimension_numbers = #tpu.dot_dimension_numbers<[1], [0], [0], [1], [0, 0, 1, 1], [], []>} : vector<32x16xbf16>, vector<16x32xbf16>, vector<32x32xf32> -> vector<32x32xf32>
    %67 = arith.addf %41, %66 : vector<32x32xf32>
    %68 = vector.extract_strided_slice %38 {offsets = [0, 16], sizes = [32, 16], strides = [1, 1]} : vector<32x96xf32> to vector<32x16xf32>
    %69 = vector.extract_strided_slice %38 {offsets = [0, 48], sizes = [32, 16], strides = [1, 1]} : vector<32x96xf32> to vector<32x16xf32>
    %70 = vector.extract_strided_slice %38 {offsets = [0, 80], sizes = [32, 16], strides = [1, 1]} : vector<32x96xf32> to vector<32x16xf32>
    %71 = arith.truncf %68 : vector<32x16xf32> to vector<32x16xbf16>
    %72 = arith.truncf %69 : vector<32x16xf32> to vector<32x16xbf16>
    %cst_31 = arith.constant dense<0.000000e+00> : vector<32x32xf32>
    %73 = tpu.matmul %71, %72, %cst_31 {dimension_numbers = #tpu.dot_dimension_numbers<[1], [1], [0], [0], [0, 0, 1, 0], [], []>} : vector<32x16xbf16>, vector<32x16xbf16>, vector<32x32xf32> -> vector<32x32xf32>
    %cst_32 = arith.constant 2.500000e-01 : f32
    %74 = vector.broadcast %cst_32 : f32 to vector<32x32xf32>
    %75 = arith.mulf %73, %74 : vector<32x32xf32>
    %76 = arith.addf %75, %4 : vector<32x32xf32>
    %cst_33 = arith.constant dense<0xFF800000> : vector<32xf32>
    %77 = vector.multi_reduction <maximumf>, %76, %cst_33 [1] : vector<32x32xf32> to vector<32xf32>
    %78 = vector.shape_cast %77 : vector<32xf32> to vector<32x1xf32>
    %79 = vector.broadcast %78 : vector<32x1xf32> to vector<32x32xf32>
    %80 = arith.subf %76, %79 : vector<32x32xf32>
    %81 = math.exp %80 : vector<32x32xf32>
    %cst_34 = arith.constant dense<0.000000e+00> : vector<32xf32>
    %82 = vector.multi_reduction <add>, %81, %cst_34 [1] : vector<32x32xf32> to vector<32xf32>
    %83 = vector.shape_cast %82 : vector<32xf32> to vector<32x1xf32>
    %84 = tpu.reciprocal %83 {approx = true} : vector<32x1xf32> -> vector<32x1xf32>
    %85 = vector.broadcast %84 : vector<32x1xf32> to vector<32x32xf32>
    %86 = arith.mulf %81, %85 : vector<32x32xf32>
    %87 = arith.truncf %86 : vector<32x32xf32> to vector<32x32xbf16>
    %88 = arith.truncf %70 : vector<32x16xf32> to vector<32x16xbf16>
    %cst_35 = arith.constant dense<0.000000e+00> : vector<32x16xf32>
    %89 = tpu.matmul %87, %88, %cst_35 {dimension_numbers = #tpu.dot_dimension_numbers<[1], [0], [0], [1], [0, 0, 1, 1], [], []>} : vector<32x32xbf16>, vector<32x16xbf16>, vector<32x16xf32> -> vector<32x16xf32>
    %90 = vector.extract_strided_slice %40 {offsets = [16, 0], sizes = [16, 32], strides = [1, 1]} : vector<32x32xbf16> to vector<16x32xbf16>
    %91 = arith.truncf %89 : vector<32x16xf32> to vector<32x16xbf16>
    %cst_36 = arith.constant dense<0.000000e+00> : vector<32x32xf32>
    %92 = tpu.matmul %91, %90, %cst_36 {dimension_numbers = #tpu.dot_dimension_numbers<[1], [0], [0], [1], [0, 0, 1, 1], [], []>} : vector<32x16xbf16>, vector<16x32xbf16>, vector<32x32xf32> -> vector<32x32xf32>
    %93 = arith.addf %67, %92 : vector<32x32xf32>
    %94 = arith.addf %3, %93 : vector<32x32xf32>
    %c0_37 = arith.constant 0 : index
    %c0_38 = arith.constant 0 : index
    %c0_39 = arith.constant 0 : index
    %95 = vector.load %arg8[%c0_37, %c0_38, %c0_39] : memref<1x1x32xf32, #tpu.memory_space<vmem>>, vector<1x1x32xf32>
    %96 = vector.shape_cast %95 : vector<1x1x32xf32> to vector<1x32xf32>
    %97 = vector.broadcast %96 : vector<1x32xf32> to vector<32x32xf32>
    %98 = arith.addf %94, %97 : vector<32x32xf32>
    %c0_40 = arith.constant 0 : index
    %c0_41 = arith.constant 0 : index
    %c0_42 = arith.constant 0 : index
    %99 = vector.load %arg9[%c0_40, %c0_41, %c0_42] : memref<1x1x32xf32, #tpu.memory_space<vmem>>, vector<1x1x32xf32>
    %100 = vector.shape_cast %99 : vector<1x1x32xf32> to vector<1x32xf32>
    %c0_43 = arith.constant 0 : index
    %c0_44 = arith.constant 0 : index
    %c0_45 = arith.constant 0 : index
    %101 = vector.load %arg10[%c0_43, %c0_44, %c0_45] : memref<1x1x32xf32, #tpu.memory_space<vmem>>, vector<1x1x32xf32>
    %102 = vector.shape_cast %101 : vector<1x1x32xf32> to vector<1x32xf32>
    %cst_46 = arith.constant dense<0.000000e+00> : vector<32xf32>
    %103 = vector.multi_reduction <add>, %98, %cst_46 [1] : vector<32x32xf32> to vector<32xf32>
    %104 = vector.shape_cast %103 : vector<32xf32> to vector<32x1xf32>
    %cst_47 = arith.constant 3.200000e+01 : f32
    %105 = vector.broadcast %cst_47 : f32 to vector<32x1xf32>
    %106 = arith.divf %104, %105 : vector<32x1xf32>
    %107 = vector.broadcast %106 : vector<32x1xf32> to vector<32x32xf32>
    %108 = arith.subf %98, %107 : vector<32x32xf32>
    %109 = arith.mulf %108, %108 : vector<32x32xf32>
    %cst_48 = arith.constant dense<0.000000e+00> : vector<32xf32>
    %110 = vector.multi_reduction <add>, %109, %cst_48 [1] : vector<32x32xf32> to vector<32xf32>
    %111 = vector.shape_cast %110 : vector<32xf32> to vector<32x1xf32>
    %cst_49 = arith.constant 3.200000e+01 : f32
    %112 = vector.broadcast %cst_49 : f32 to vector<32x1xf32>
    %113 = arith.divf %111, %112 : vector<32x1xf32>
    %114 = vector.broadcast %106 : vector<32x1xf32> to vector<32x32xf32>
    %115 = arith.subf %98, %114 : vector<32x32xf32>
    %cst_50 = arith.constant 9.99999974E-6 : f32
    %116 = vector.broadcast %cst_50 : f32 to vector<32x1xf32>
    %117 = arith.addf %113, %116 : vector<32x1xf32>
    %118 = math.rsqrt %117 : vector<32x1xf32>
    %119 = vector.broadcast %118 : vector<32x1xf32> to vector<32x32xf32>
    %120 = arith.mulf %115, %119 : vector<32x32xf32>
    %121 = vector.broadcast %100 : vector<1x32xf32> to vector<32x32xf32>
    %122 = arith.mulf %120, %121 : vector<32x32xf32>
    %123 = vector.broadcast %102 : vector<1x32xf32> to vector<32x32xf32>
    %124 = arith.addf %122, %123 : vector<32x32xf32>
    %c0_51 = arith.constant 0 : index
    %c0_52 = arith.constant 0 : index
    %c0_53 = arith.constant 0 : index
    %125 = vector.load %arg11[%c0_51, %c0_52, %c0_53] : memref<1x32x128xbf16, #tpu.memory_space<vmem>>, vector<1x32x128xbf16>
    %126 = vector.shape_cast %125 : vector<1x32x128xbf16> to vector<32x128xbf16>
    %127 = arith.truncf %124 : vector<32x32xf32> to vector<32x32xbf16>
    %cst_54 = arith.constant dense<0.000000e+00> : vector<32x128xf32>
    %128 = tpu.matmul %127, %126, %cst_54 {dimension_numbers = #tpu.dot_dimension_numbers<[1], [0], [0], [1], [0, 0, 1, 1], [], []>} : vector<32x32xbf16>, vector<32x128xbf16>, vector<32x128xf32> -> vector<32x128xf32>
    %c0_55 = arith.constant 0 : index
    %c0_56 = arith.constant 0 : index
    %c0_57 = arith.constant 0 : index
    %129 = vector.load %arg12[%c0_55, %c0_56, %c0_57] : memref<1x1x128xf32, #tpu.memory_space<vmem>>, vector<1x1x128xf32>
    %130 = vector.shape_cast %129 : vector<1x1x128xf32> to vector<1x128xf32>
    %131 = vector.broadcast %130 : vector<1x128xf32> to vector<32x128xf32>
    %132 = arith.addf %128, %131 : vector<32x128xf32>
    %cst_58 = arith.constant 5.000000e-01 : f32
    %133 = vector.broadcast %cst_58 : f32 to vector<32x128xf32>
    %134 = arith.mulf %133, %132 : vector<32x128xf32>
    %cst_59 = arith.constant 4.471500e-02 : f32
    %135 = vector.broadcast %cst_59 : f32 to vector<32x128xf32>
    %136 = arith.mulf %135, %132 : vector<32x128xf32>
    %137 = arith.mulf %136, %132 : vector<32x128xf32>
    %138 = arith.mulf %137, %132 : vector<32x128xf32>
    %139 = arith.addf %132, %138 : vector<32x128xf32>
    %cst_60 = arith.constant 0.797884583 : f32
    %140 = vector.broadcast %cst_60 : f32 to vector<32x128xf32>
    %141 = arith.mulf %140, %139 : vector<32x128xf32>
    %142 = math.tanh %141 : vector<32x128xf32>
    %cst_61 = arith.constant 1.000000e+00 : f32
    %143 = vector.broadcast %cst_61 : f32 to vector<32x128xf32>
    %144 = arith.addf %143, %142 : vector<32x128xf32>
    %145 = arith.mulf %134, %144 : vector<32x128xf32>
    %c0_62 = arith.constant 0 : index
    %c0_63 = arith.constant 0 : index
    %c0_64 = arith.constant 0 : index
    %146 = vector.load %arg13[%c0_62, %c0_63, %c0_64] : memref<1x128x32xbf16, #tpu.memory_space<vmem>>, vector<1x128x32xbf16>
    %147 = vector.shape_cast %146 : vector<1x128x32xbf16> to vector<128x32xbf16>
    %148 = arith.truncf %145 : vector<32x128xf32> to vector<32x128xbf16>
    %cst_65 = arith.constant dense<0.000000e+00> : vector<32x32xf32>
    %149 = tpu.matmul %148, %147, %cst_65 {dimension_numbers = #tpu.dot_dimension_numbers<[1], [0], [0], [1], [0, 0, 1, 1], [], []>} : vector<32x128xbf16>, vector<128x32xbf16>, vector<32x32xf32> -> vector<32x32xf32>
    %150 = arith.addf %98, %149 : vector<32x32xf32>
    %c0_66 = arith.constant 0 : index
    %c0_67 = arith.constant 0 : index
    %c0_68 = arith.constant 0 : index
    %151 = vector.load %arg14[%c0_66, %c0_67, %c0_68] : memref<1x1x32xf32, #tpu.memory_space<vmem>>, vector<1x1x32xf32>
    %152 = vector.shape_cast %151 : vector<1x1x32xf32> to vector<1x32xf32>
    %153 = vector.broadcast %152 : vector<1x32xf32> to vector<32x32xf32>
    %154 = arith.addf %150, %153 : vector<32x32xf32>
    %c0_69 = arith.constant 0 : index
    %c0_70 = arith.constant 0 : index
    %155 = vector.load %arg19[%c0_69, %c0_70] : memref<32x32xf32, #tpu.memory_space<vmem>>, vector<32x32xf32>
    tpu.vector_store %arg19[%c0_69, %c0_70], %154 {strides = array<i32>} : memref<32x32xf32, #tpu.memory_space<vmem>>, vector<32x32xf32>,
    %c1_i32 = arith.constant 1 : i32
    %156 = arith.cmpi eq, %arg0, %c1_i32 : i32
    %157 = arith.extui %156 : i1 to i32
    %c0_i32_71 = arith.constant 0 : i32
    %158 = arith.cmpi ne, %157, %c0_i32_71 : i32
    scf.if %158 {
      %c0_72 = arith.constant 0 : index
      %c0_73 = arith.constant 0 : index
      %159 = vector.load %arg15[%c0_72, %c0_73] : memref<1x32xf32, #tpu.memory_space<vmem>>, vector<1x32xf32>
      %c0_74 = arith.constant 0 : index
      %c0_75 = arith.constant 0 : index
      %160 = vector.load %arg16[%c0_74, %c0_75] : memref<1x32xf32, #tpu.memory_space<vmem>>, vector<1x32xf32>
      %cst_76 = arith.constant dense<0.000000e+00> : vector<32xf32>
      %161 = vector.multi_reduction <add>, %154, %cst_76 [1] : vector<32x32xf32> to vector<32xf32>
      %162 = vector.shape_cast %161 : vector<32xf32> to vector<32x1xf32>
      %cst_77 = arith.constant 3.200000e+01 : f32
      %163 = vector.broadcast %cst_77 : f32 to vector<32x1xf32>
      %164 = arith.divf %162, %163 : vector<32x1xf32>
      %165 = vector.broadcast %164 : vector<32x1xf32> to vector<32x32xf32>
      %166 = arith.subf %154, %165 : vector<32x32xf32>
      %167 = arith.mulf %166, %166 : vector<32x32xf32>
      %cst_78 = arith.constant dense<0.000000e+00> : vector<32xf32>
      %168 = vector.multi_reduction <add>, %167, %cst_78 [1] : vector<32x32xf32> to vector<32xf32>
      %169 = vector.shape_cast %168 : vector<32xf32> to vector<32x1xf32>
      %cst_79 = arith.constant 3.200000e+01 : f32
      %170 = vector.broadcast %cst_79 : f32 to vector<32x1xf32>
      %171 = arith.divf %169, %170 : vector<32x1xf32>
      %172 = vector.broadcast %164 : vector<32x1xf32> to vector<32x32xf32>
      %173 = arith.subf %154, %172 : vector<32x32xf32>
      %cst_80 = arith.constant 9.99999974E-6 : f32
      %174 = vector.broadcast %cst_80 : f32 to vector<32x1xf32>
      %175 = arith.addf %171, %174 : vector<32x1xf32>
      %176 = math.rsqrt %175 : vector<32x1xf32>
      %177 = vector.broadcast %176 : vector<32x1xf32> to vector<32x32xf32>
      %178 = arith.mulf %173, %177 : vector<32x32xf32>
      %179 = vector.broadcast %159 : vector<1x32xf32> to vector<32x32xf32>
      %180 = arith.mulf %178, %179 : vector<32x32xf32>
      %181 = vector.broadcast %160 : vector<1x32xf32> to vector<32x32xf32>
      %182 = arith.addf %180, %181 : vector<32x32xf32>
      %c0_81 = arith.constant 0 : index
      %c0_82 = arith.constant 0 : index
      %183 = vector.load %arg17[%c0_81, %c0_82] : memref<32x128xbf16, #tpu.memory_space<vmem>>, vector<32x128xbf16>
      %184 = arith.truncf %182 : vector<32x32xf32> to vector<32x32xbf16>
      %cst_83 = arith.constant dense<0.000000e+00> : vector<32x128xf32>
      %185 = tpu.matmul %184, %183, %cst_83 {dimension_numbers = #tpu.dot_dimension_numbers<[1], [0], [0], [1], [0, 0, 1, 1], [], []>} : vector<32x32xbf16>, vector<32x128xbf16>, vector<32x128xf32> -> vector<32x128xf32>
      %c0_84 = arith.constant 0 : index
      %c0_85 = arith.constant 0 : index
      %186 = vector.load %arg18[%c0_84, %c0_85] : memref<32x128xf32, #tpu.memory_space<vmem>>, vector<32x128xf32>
      tpu.vector_store %arg18[%c0_84, %c0_85], %185 {strides = array<i32>} : memref<32x128xf32, #tpu.memory_space<vmem>>, vector<32x128xf32>,
    } else {
    }
    return
  }
  func.func @transform_1(%arg0: i32) -> (i32, i32) {
    %c0_i32 = arith.constant 0 : i32
    %c0_i32_0 = arith.constant 0 : i32
    %c0_i32_1 = arith.constant 0 : i32
    return %c0_i32, %c0_i32_0 : i32, i32
  }
  func.func @transform_2(%arg0: i32) -> (i32, i32, i32) {
    %c0_i32 = arith.constant 0 : i32
    %c0_i32_0 = arith.constant 0 : i32
    %c0_i32_1 = arith.constant 0 : i32
    return %arg0, %c0_i32, %c0_i32_0 : i32, i32, i32
  }
  func.func @transform_3(%arg0: i32) -> (i32, i32, i32) {
    %c0_i32 = arith.constant 0 : i32
    %c0_i32_0 = arith.constant 0 : i32
    %c0_i32_1 = arith.constant 0 : i32
    return %arg0, %c0_i32, %c0_i32_0 : i32, i32, i32
  }
  func.func @transform_4(%arg0: i32) -> (i32, i32, i32) {
    %c0_i32 = arith.constant 0 : i32
    %c0_i32_0 = arith.constant 0 : i32
    %c0_i32_1 = arith.constant 0 : i32
    return %arg0, %c0_i32, %c0_i32_0 : i32, i32, i32
  }
  func.func @transform_5(%arg0: i32) -> (i32, i32, i32) {
    %c0_i32 = arith.constant 0 : i32
    %c0_i32_0 = arith.constant 0 : i32
    %c0_i32_1 = arith.constant 0 : i32
    return %arg0, %c0_i32, %c0_i32_0 : i32, i32, i32
  }
  func.func @transform_6(%arg0: i32) -> (i32, i32, i32) {
    %c0_i32 = arith.constant 0 : i32
    %c0_i32_0 = arith.constant 0 : i32
    %c0_i32_1 = arith.constant 0 : i32
    return %arg0, %c0_i32, %c0_i32_0 : i32, i32, i32
  }
  func.func @transform_7(%arg0: i32) -> (i32, i32, i32) {
    %c0_i32 = arith.constant 0 : i32
    %c0_i32_0 = arith.constant 0 : i32
    %c0_i32_1 = arith.constant 0 : i32
    return %arg0, %c0_i32, %c0_i32_0 : i32, i32, i32
  }
  func.func @transform_8(%arg0: i32) -> (i32, i32, i32) {
    %c0_i32 = arith.constant 0 : i32
    %c0_i32_0 = arith.constant 0 : i32
    %c0_i32_1 = arith.constant 0 : i32
    return %arg0, %c0_i32, %c0_i32_0 : i32, i32, i32
  }
  func.func @transform_9(%arg0: i32) -> (i32, i32, i32) {
    %c0_i32 = arith.constant 0 : i32
    %c0_i32_0 = arith.constant 0 : i32
    %c0_i32_1 = arith.constant 0 : i32
    return %arg0, %c0_i32, %c0_i32_0 : i32, i32, i32
  }
  func.func @transform_10(%arg0: i32) -> (i32, i32, i32) {
    %c0_i32 = arith.constant 0 : i32
    %c0_i32_0 = arith.constant 0 : i32
    %c0_i32_1 = arith.constant 0 : i32
    return %arg0, %c0_i32, %c0_i32_0 : i32, i32, i32
  }
  func.func @transform_11(%arg0: i32) -> (i32, i32, i32) {
    %c0_i32 = arith.constant 0 : i32
    %c0_i32_0 = arith.constant 0 : i32
    %c0_i32_1 = arith.constant 0 : i32
    return %arg0, %c0_i32, %c0_i32_0 : i32, i32, i32
  }
  func.func @transform_12(%arg0: i32) -> (i32, i32, i32) {
    %c0_i32 = arith.constant 0 : i32
    %c0_i32_0 = arith.constant 0 : i32
    %c0_i32_1 = arith.constant 0 : i32
    return %arg0, %c0_i32, %c0_i32_0 : i32, i32, i32
  }
  func.func @transform_13(%arg0: i32) -> (i32, i32, i32) {
    %c0_i32 = arith.constant 0 : i32
    %c0_i32_0 = arith.constant 0 : i32
    %c0_i32_1 = arith.constant 0 : i32
    return %arg0, %c0_i32, %c0_i32_0 : i32, i32, i32
  }
  func.func @transform_14(%arg0: i32) -> (i32, i32) {
    %c0_i32 = arith.constant 0 : i32
    %c0_i32_0 = arith.constant 0 : i32
    %c0_i32_1 = arith.constant 0 : i32
    return %c0_i32, %c0_i32_0 : i32, i32
  }
  func.func @transform_15(%arg0: i32) -> (i32, i32) {
    %c0_i32 = arith.constant 0 : i32
    %c0_i32_0 = arith.constant 0 : i32
    %c0_i32_1 = arith.constant 0 : i32
    return %c0_i32, %c0_i32_0 : i32, i32
  }
  func.func @transform_16(%arg0: i32) -> (i32, i32) {
    %c0_i32 = arith.constant 0 : i32
    %c0_i32_0 = arith.constant 0 : i32
    %c0_i32_1 = arith.constant 0 : i32
    return %c0_i32, %c0_i32_0 : i32, i32
  }
  func.func @transform_17(%arg0: i32) -> (i32, i32) {
    %c0_i32 = arith.constant 0 : i32
    %c0_i32_0 = arith.constant 0 : i32
    %c0_i32_1 = arith.constant 0 : i32
    return %c0_i32, %c0_i32_0 : i32, i32
  }
}

</mosaic_0001>

<bundles_post_ra>
// kernel: model_forward.1
= control target key start
LH: loop header
LB: loop body
LE: loop exit
PB: predicated region body
PF: predicated region fallthrough
CT: control target
= control target key end

     0   :  { %s2446_s24 = smov 0   ;;  %s2771_s0 = inlined_call_operand.vmem [shape: f32[32,32], index: 0, kind: input, shape index: {}]   ;;  %s2772_s1 = inlined_call_operand.vmem [shape: f32[32,32], index: 1, kind: input, shape index: {}]   ;;  %s2773_s2 = inlined_call_operand.vmem [shape: f32[2,1,32], index: 2, kind: input, shape index: {}]   ;;  %s2774_s3 = inlined_call_operand.vmem [shape: f32[2,1,32], index: 3, kind: input, shape index: {}]   ;;  %s2775_s4 = inlined_call_operand.vmem [shape: bf16[2,32,96], index: 4, kind: input, shape index: {}]   ;;  %s2776_s5 = inlined_call_operand.vmem [shape: f32[2,1,96], index: 5, kind: input, shape index: {}]   ;;  %s2777_s6 = inlined_call_operand.vmem [shape: bf16[2,32,32], index: 6, kind: input, shape index: {}]   ;;  %s2778_s7 = inlined_call_operand.vmem [shape: f32[2,1,32], index: 7, kind: input, shape index: {}]   ;;  %s2779_s8 = inlined_call_operand.vmem [shape: f32[2,1,32], index: 8, kind: input, shape index: {}]   ;;  %s2780_s9 = inlined_call_operand.vmem [shape: f32[2,1,32], index: 9, kind: input, shape index: {}]   ;;  %s2781_s10 = inlined_call_operand.vmem [shape: bf16[2,32,128], index: 10, kind: input, shape index: {}]   ;;  %s2782_s11 = inlined_call_operand.vmem [shape: f32[2,1,128], index: 11, kind: input, shape index: {}]   ;;  %s2783_s12 = inlined_call_operand.vmem [shape: bf16[2,128,32], index: 12, kind: input, shape index: {}]   ;;  %s2784_s13 = inlined_call_operand.vmem [shape: f32[2,1,32], index: 13, kind: input, shape index: {}]   ;;  %s2785_s14 = inlined_call_operand.vmem [shape: f32[1,32], index: 14, kind: input, shape index: {}]   ;;  %s2786_s15 = inlined_call_operand.vmem [shape: f32[1,32], index: 15, kind: input, shape index: {}]   ;;  %s2787_s16 = inlined_call_operand.vmem [shape: bf16[32,128], index: 16, kind: input, shape index: {}]   ;;  %s2788_s17 = inlined_call_operand.vmem [shape: f32[32,128], index: 17, kind: output, shape index: {}]  }
   0x1   :  { %2794 = sst [smem:[#allocation7_spill]] %s2771_s0 }
   0x2   :  { %2795 = sst [smem:[#allocation8_spill]] %s2772_s1 }
   0x3   :  { %2796 = sst [smem:[#allocation9_spill]] %s2775_s4 }
   0x4   :  { %2797 = sst [smem:[#allocation10_spill]] %s2777_s6 }
   0x5   :  { %2798 = sst [smem:[#allocation11_spill]] %s2785_s14 }
   0x6   :  { %2799 = sst [smem:[#allocation12_spill]] %s2786_s15 }
   0x7   :  { %2800 = sst [smem:[#allocation13_spill]] %s2787_s16 }
   0x8   :  { %2801 = sst [smem:[#allocation14_spill]] %s2788_s17 }
   0x9 LB: > { %2802 = sst [smem:[#allocation6_spill]] %s2349_s24  ;;  %s2452_s25 = sadd.s32 4294967295, %s2349_s24   ;;  %s2349_s24 = sphi %s2446_s24, %s27_s24  }
   0xa   : > { %p2046_p0 = scmp.ge.s32.totalorder %s2349_s24, 1  ;;  %p552_p1 = scmp.lt.s32.totalorder %s2349_s24, 3 }
   0xc   : > { %p553_p2 = pnand %p2046_p0, %p552_p1 }
   0xd   : > { %p636_p3 = scmp.lt.s32.totalorder (!%p553_p2), %s2452_s25, 1  ;;  %s2803_s4 = sld [smem:[#allocation9_spill]] (!%p553_p2) }
   0xe   : > { %556 = sbr.rel (%p553_p2) target bundleno = 3107 (0xc23), region = 84  ;;  %s2804_s6 = sld [smem:[#allocation10_spill]] (!%p553_p2) }
   0xf   : > { %p2055_p4 = scmp.ne.s32.totalorder (!%p553_p2), %s2452_s25, 0 }
  0x15   : > { %s2458_s26 = scalar_select %p636_p3, %s2452_s25, 1 }
  0x16   : > { %684 = sbr.rel (%p2055_p4) target bundleno = 34 (0x22), region = 88  ;;  %s2805_s22 = sld [smem:[#allocation7_spill]] (!%p2055_p4) }
  0x17   : > { %s2104_s19 = sshll.u32 %s2458_s26, 4  ;;  %s660_s14 = scalar_lea.vmem %s2779_s8, %s2458_s26 }
  0x18   : > { %s2476_s27 = scalar_lea.vmem %s2803_s4, %s2104_s19  ;;  %s2481_s17 = scalar_lea.vmem %s2804_s6, %s2104_s19 }
  0x19   : > { %s663_s21 = scalar_lea.vmem %s2780_s9, %s2458_s26  ;;  %s2498_s4 = scalar_lea.vmem %s2781_s10, %s2104_s19 }
  0x1a   : > { %s2107_s16 = sshll.u32 %s2458_s26, 6  ;;  %s679_s1 = scalar_lea.vmem %s2784_s13, %s2458_s26 }
  0x1b   : > { %s2508_s0 = scalar_lea.vmem %s2783_s12, %s2107_s16 }
  0x1c   : > { %v717_v0 = vld [vmem:[%s2805_s22] sm:$0xff] (!%p2055_p4)  ;;  %v719_v1 = vld [vmem:[%s2805_s22 + $0x8] sm:$0xff] (!%p2055_p4)  ;;  %v721_v2 = vld [vmem:[%s2805_s22 + $0x10] sm:$0xff] (!%p2055_p4) }
  0x1d   : > { %718 = vst [vmem:[#allocation2] sm:$0xff] %v717_v0  ;;  %720 = vst [vmem:[#allocation2 + $0x8] sm:$0xff] %v719_v1  ;;  %v723_v3 = vld [vmem:[%s2805_s22 + $0x18] sm:$0xff] }
  0x1e   : > { %722 = vst [vmem:[#allocation2 + $0x10] sm:$0xff] %v721_v2  ;;  %724 = vst [vmem:[#allocation2 + $0x18] sm:$0xff] %v723_v3 }
  0x1f   : > { %732 = vsyncadd [#allocation3], 512 }
  0x20   : > { %2345 = dma.done.wait [#allocation3], 512 }
  0x21   : > { %2346 = vsyncadd [#allocation3], 4294966784 }
  0x22 PF: > { %vm746_vm0 = vcmask 261120   ;;  %v2261_v32 = vld [vmem:[%s2476_s27] sm:$0xff]   ;;  %v2262_v33 = vld [vmem:[%s2476_s27 + $0x8] sm:$0xff]   ;;  %s2806_s29 = scalar_lea.vmem %s2773_s2, %s2458_s26  ;;  %s2807_s20 = scalar_lea.vmem %s2774_s3, %s2458_s26  ;;  %vm912_vm1 = vcmask 130048  }
  0x23   : > { %2152 = vmatprep.subr.bf16.mxu0 %v2261_v32  ;;  %v2056_v48 = vld [vmem:[%s2806_s29] ss:$0 sm:$0xff]  ;;  %s2808_s24 = scalar_lea.vmem %s2776_s5, %s2458_s26  ;;  %s2351_s28 = smov 96  }
  0x24   : > { %2153 = vmatpush3.bf16.msra.mxu0 %v2261_v32  ;;  %v2057_v54 = vld [vmem:[%s2807_s20] ss:$0 sm:$0xff]  ;;  %s2352_s16 = smov 80   ;;  %s2353_s15 = smov 112  }
  0x25   : > { %v2529_v5 = vld [vmem:[#allocation2 + $0x10] sm:$0xff]  ;;  %v2537_v9 = vld [vmem:[#allocation2 + $0x18] sm:$0xff]  ;;  %2154 = vmatprep.subr.bf16.mxu0 %v2262_v33  ;;  %v2058_v3 = vld [vmem:[%s2808_s24] ss:$0 sm:$0xff]  ;;  %s2809_s29 = sld [smem:[#allocation8_spill]]  ;;  %s2810_s6 = scalar_lea.vmem %s2778_s7, %s2458_s26 }
  0x26   : > { %v753_v8 = vsel %vm746_vm0, %v2529_v5, 0.0  ;;  %v756_v11 = vsel %vm746_vm0, %v2537_v9, 0.0  ;;  %s2811_s20 = scalar_lea.vmem %s2782_s11, %s2458_s26  ;;  %p2094_p5 = scmp.ne.s32.totalorder %s2452_s25, 1 }
  0x27   : > { %754 = vadd.xlane.f32.xlu1 %v753_v8  ;;  %s2815_s30 = sld [smem:[#allocation14_spill]] (!%p2094_p5) }
  0x28   : > { %2155 = vmatpush3.bf16.msra.mxu0 %v2262_v33 }
  0x29   : > { %v2527_v4 = vld [vmem:[#allocation2] sm:$0xff]  ;;  %v2531_v6 = vld [vmem:[#allocation2 + $0x8] sm:$0xff] }
  0x2a   : > { %v747_v7 = vsel %vm746_vm0, %v2527_v4, 0.0  ;;  %v750_v10 = vsel %vm746_vm0, %v2531_v6, 0.0 }
  0x2b   : > { %748 = vadd.xlane.f32.xlu0 %v747_v7  ;;  %757 = vadd.xlane.f32.xlu1 %v756_v11 }
  0x2f   : > { %751 = vadd.xlane.f32.xlu0 %v750_v10 }
  0xb4   : > { %v755_v13 = vpop.xlane.xlu1 %754 }
  0xb5   : > { %v762_v15 = vmul.f32 0.03125, %v755_v13 }
  0xb7   : > { %v766_v17 = vsub.f32 %v2529_v5, %v762_v15 }
  0xb8   : > { %v749_v12 = vpop.xlane.xlu0 %748  ;;  %v758_v19 = vpop.xlane.xlu1 %757 }
  0xb9   : > { %v760_v14 = vmul.f32 0.03125, %v749_v12  ;;  %v763_v21 = vmul.f32 0.03125, %v758_v19  ;;  %v770_v23 = vmul.f32 %v766_v17, %v766_v17 }
  0xbb   : > { %v764_v16 = vsub.f32 %v2527_v4, %v760_v14  ;;  %v767_v25 = vsub.f32 %v2537_v9, %v763_v21  ;;  %v778_v27 = vsel %vm746_vm0, %v770_v23, 0.0 }
  0xbc   : > { %v752_v18 = vpop.xlane.xlu0 %751 }
  0xbd   : > { %v761_v20 = vmul.f32 0.03125, %v752_v18  ;;  %v768_v22 = vmul.f32 %v764_v16, %v764_v16  ;;  %v771_v29 = vmul.f32 %v767_v25, %v767_v25 }
  0xbf   : > { %v765_v24 = vsub.f32 %v2531_v6, %v761_v20  ;;  %v772_v26 = vsel %vm746_vm0, %v768_v22, 0.0  ;;  %v781_v31 = vsel %vm746_vm0, %v771_v29, 0.0 }
  0xc0   : > { %773 = vadd.xlane.f32.xlu0 %v772_v26 }
  0xc1   : > { %v769_v28 = vmul.f32 %v765_v24, %v765_v24 }
  0xc3   : > { %v775_v30 = vsel %vm746_vm0, %v769_v28, 0.0 }
  0xc4   : > { %779 = vadd.xlane.f32.xlu0 %v778_v27  ;;  %776 = vadd.xlane.f32.xlu1 %v775_v30 }
  0xc8   : > { %782 = vadd.xlane.f32.xlu1 %v781_v31 }
 0x14d   : > { %v774_v34 = vpop.xlane.xlu0 %773 }
 0x14e   : > { %v784_v35 = vmul.f32 0.03125, %v774_v34 }
 0x150   : > { %v788_v36 = vadd.f32 1e-05, %v784_v35 }
 0x151   : > { %v777_v37 = vpop.xlane.xlu1 %776  ;;  %v780_v38 = vpop.xlane.xlu0 %779 }
 0x152   : > { %2275 = vrsqrt.f32 %v788_v36  ;;  %v785_v39 = vmul.f32 0.03125, %v777_v37  ;;  %v786_v40 = vmul.f32 0.03125, %v780_v38  ;;  %v740_v37 = vld [vmem:[%s2809_s29] sm:$0xff] }
 0x154   : > { %v789_v41 = vadd.f32 1e-05, %v785_v39  ;;  %v790_v42 = vadd.f32 1e-05, %v786_v40 }
 0x155   : > { %v783_v43 = vpop.xlane.xlu1 %782 }
 0x156   : > { %2277 = vrsqrt.f32 %v789_v41  ;;  %v787_v44 = vmul.f32 0.03125, %v783_v43  ;;  %v741_v41 = vld [vmem:[%s2809_s29 + $0x8] sm:$0xff] }
 0x157   : > { %2279 = vrsqrt.f32 %v790_v42  ;;  %v742_v42 = vld [vmem:[%s2809_s29 + $0x10] sm:$0xff] }
 0x158   : > { %v791_v45 = vadd.f32 1e-05, %v787_v44 }
 0x15a   : > { %2281 = vrsqrt.f32 %v791_v45 }
 0x15c   : > { %v2276_v46 = vpop.eup %2275 }
 0x15d   : > { %v796_v47 = vmul.f32 %v2276_v46, %v764_v16 }
 0x15f   : > { %v806_v52 = vmul.f32 %v2056_v48, %v796_v47 }
 0x160   : > { %v2278_v49 = vpop.eup %2277 }
 0x161   : > { %v2280_v50 = vpop.eup %2279  ;;  %v797_v51 = vmul.f32 %v2278_v49, %v765_v24  ;;  %v816_v58 = vadd.f32 %v2057_v54, %v806_v52 }
 0x162   : > { %v798_v53 = vmul.f32 %v2280_v50, %v766_v17  ;;  %v743_v50 = vld [vmem:[%s2809_s29 + $0x18] sm:$0xff] }
 0x163   : > { %v807_v55 = vmul.f32 %v2056_v48, %v797_v51 }
 0x164   : > { %v2282_v56 = vpop.eup %2281  ;;  %v808_v60 = vmul.f32 %v2056_v48, %v798_v53 }
 0x165   : > { %v799_v57 = vmul.f32 %v2282_v56, %v767_v25  ;;  %v817_v59 = vadd.f32 %v2057_v54, %v807_v55 }
 0x166   : > { %v818_v63 = vadd.f32 %v2057_v54, %v808_v60 }
 0x167   : > { %v824_v61 = vpack.c.bf16 %v817_v59, %v816_v58  ;;  %v809_v62 = vmul.f32 %v2056_v48, %v799_v57 }
 0x169   : > { %2156 = vmatprep.mubr.msk.bf16.mxu0 %vm746_vm0, %v824_v61  ;;  %v819_v0 = vadd.f32 %v2057_v54, %v809_v62 }
 0x16b   : > { %v825_v1 = vpack.c.bf16 %v819_v0, %v818_v63 }
 0x16d   : > { %2157 = vmatmul.mubr.msk.bf16.vlgmr.msra.gmra.mrb[0].mxu0 %vm746_vm0, %v825_v1 }
 0x240   : > { %v2158_v2 = vpop.f32.mrb[0].mxu0 }
 0x241   : > { %v885_v7 = vpop.f32.mrb[1].mxu0  ;;  %v894_v10 = vadd.f32 %v2158_v2, %v2058_v3 }
 0x242   : > { %v2159_v8 = vpop.f32.mrb[2].mxu0  ;;  %v886_v13 = vadd.f32 %v2058_v3, %v885_v7 }
 0x243   : > { %v897_v11 = vadd.f32 %v2159_v8, %v2058_v3  ;;  %v888_v12 = vpop.f32.mrb[3].mxu0 }
 0x244   : > { %v889_v14 = vadd.f32 %v2058_v3, %v888_v12 }
 0x245   : > { %v2570_v15 = vpack.c.bf16 %v897_v11, %v894_v10 }
 0x246   : > { %v2572_v16 = vpack.c.bf16 %v889_v14, %v886_v13 }
 0x247   : > { %910 = vrot.lane.b32.xlu1 %v2570_v15, %s2351_s28 }
 0x248   : > { %908 = vrot.lane.b32.xlu0 %v2572_v16, %s2351_s28  ;;  %2164 = vmatprep.mubr.msk.bf16.mxu1 %vm912_vm1, %v2572_v16  ;;  %s2354_s28 = smov 48  }
 0x24b   : > { %1095 = vrot.lane.b32.xlu1 %v2572_v16, %s2352_s16 }
 0x24c   : > { %1091 = vrot.lane.b32.xlu0 %v2572_v16, %s2353_s15 }
 0x24f   : > { %1097 = vrot.lane.b32.xlu1 %v2570_v15, %s2352_s16  ;;  %s2355_s16 = smov 64  }
 0x253   : > { %1093 = vrot.lane.b32.xlu1 %v2570_v15, %s2353_s15 }
 0x2b9   : > { %v911_v19 = vpop.permute.xlu1 %910 }
 0x2ba   : > { %v909_v17 = vpop.permute.xlu0 %908  ;;  %v923_v20 = vsel %vm912_vm1, %v911_v19, 0 }
 0x2bb   : > { %2244 = vmatprep.subr.msk.bf16.mxu1 %vm912_vm1, %v909_v17  ;;  %v920_v18 = vsel %vm912_vm1, %v909_v17, 0 }
 0x2bc   : > { %2161 = vmatpush3.bf16.xpose.msra.mxu1 %v920_v18 }
 0x2bd   : > { %2245 = vmatprep.subr.msk.bf16.mxu1 %vm912_vm1, %v911_v19  ;;  %v1096_v21 = vpop.permute.xlu1 %1095 }
 0x2be   : > { %v1106_v22 = vsel %vm912_vm1, %v1096_v21, 0  ;;  %v1092_v23 = vpop.permute.xlu0 %1091 }
 0x2c1   : > { %v1098_v24 = vpop.permute.xlu1 %1097 }
 0x2c2   : > { %v1109_v25 = vsel %vm912_vm1, %v1098_v24, 0 }
 0x2c4   : > { %2163 = vmatpush3.bf16.xpose.msra.mxu1 %v923_v20 }
 0x2c5   : > { %2246 = vmatprep.subr.msk.bf16.mxu1 %vm912_vm1, %v1096_v21  ;;  %v1094_v26 = vpop.permute.xlu1 %1093 }
 0x2cb   : > { %2165 = vmatmul.mubr.msk.bf16.vlgmr.msra.gmra.mrb[0].mxu1 %vm912_vm1, %v2570_v15 }
 0x2cc   : > { %2177 = vmatpush3.bf16.xpose.msra.mxu1 %v1106_v22  ;;  %2180 = vmatprep.mubr.msk.bf16.mxu1 %vm912_vm1, %v1092_v23 }
 0x2cd   : > { %2247 = vmatprep.subr.msk.bf16.mxu1 %vm912_vm1, %v1098_v24 }
 0x2d4   : > { %2179 = vmatpush3.bf16.xpose.msra.mxu1 %v1109_v25 }
 0x2db   : > { %2181 = vmatmul.mubr.msk.bf16.vlgmr.msra.gmra.mrb[4].mxu1 %vm912_vm1, %v1094_v26 }
 0x39e   : > { %v2166_v27 = vpop.f32.mrb[0].mxu1 }
 0x39f   : > { %v959_v28 = vpop.f32.mrb[1].mxu1  ;;  %v976_v56 = vmul.f32 0.25, %v2166_v27 }
 0x3a0   : > { %v2167_v29 = vpop.f32.mrb[2].mxu1  ;;  %v974_v51 = vmul.f32 0.25, %v959_v28 }
 0x3a1   : > { %v962_v30 = vpop.f32.mrb[3].mxu1  ;;  %v977_v47 = vmul.f32 0.25, %v2167_v29  ;;  %v980_v61 = vadd.f32 %v976_v56, %v742_v42 }
 0x3a2   : > { %v975_v38 = vmul.f32 0.25, %v962_v30  ;;  %v978_v58 = vadd.f32 %v974_v51, %v740_v37 }
 0x3a3   : > { %v981_v55 = vadd.f32 %v977_v47, %v743_v50  ;;  %v988_v62 = vsel %vm746_vm0, %v980_v61, -inf }
 0x3a4   : > { %v979_v49 = vadd.f32 %v975_v38, %v741_v41  ;;  %v982_v60 = vsel %vm746_vm0, %v978_v58, -inf }
 0x3a5   : > { %v991_v59 = vsel %vm746_vm0, %v981_v55, -inf }
 0x3a6   : > { %v985_v54 = vsel %vm746_vm0, %v979_v49, -inf }
 0x3ae   : > { %v2182_v31 = vpop.f32.mrb[4].mxu1 }
 0x3af   : > { %v1145_v32 = vpop.f32.mrb[5].mxu1  ;;  %v1162_v33 = vmul.f32 0.25, %v2182_v31 }
 0x3b0   : > { %v1160_v34 = vmul.f32 0.25, %v1145_v32  ;;  %v2183_v35 = vpop.f32.mrb[6].mxu1 }
 0x3b1   : > { %v1148_v36 = vpop.f32.mrb[7].mxu1  ;;  %v1163_v43 = vmul.f32 0.25, %v2183_v35  ;;  %v1166_v46 = vadd.f32 %v1162_v33, %v742_v42 }
 0x3b2   : > { %v1161_v39 = vmul.f32 0.25, %v1148_v36  ;;  %v1164_v40 = vadd.f32 %v1160_v34, %v740_v37 }
 0x3b3   : > { %v1174_v52 = vsel %vm746_vm0, %v1166_v46, -inf  ;;  %v2612_v53 = vadd.f32 %v1163_v43, %v743_v50 }
 0x3b4   : > { %v1168_v44 = vsel %vm746_vm0, %v1164_v40, -inf  ;;  %v2604_v45 = vadd.f32 %v1161_v39, %v741_v41 }
 0x3b5   : > { %1169 = vmax.xlane.f32.xlu0 %v1168_v44  ;;  %v1177_v57 = vsel %vm746_vm0, %v2612_v53, -inf }
 0x3b6   : > { %v1171_v48 = vsel %vm746_vm0, %v2604_v45, -inf }
 0x3b7   : > { %1172 = vmax.xlane.f32.xlu1 %v1171_v48 }
 0x3b9   : > { %1175 = vmax.xlane.f32.xlu0 %v1174_v52 }
 0x3bb   : > { %986 = vmax.xlane.f32.xlu1 %v985_v54 }
 0x3bd   : > { %1178 = vmax.xlane.f32.xlu0 %v1177_v57 }
 0x3bf   : > { %992 = vmax.xlane.f32.xlu1 %v991_v59 }
 0x3c1   : > { %983 = vmax.xlane.f32.xlu0 %v982_v60 }
 0x3c5   : > { %989 = vmax.xlane.f32.xlu0 %v988_v62 }
 0x442   : > { %v1170_v63 = vpop.xlane.xlu0 %1169 }
 0x443   : > { %v1180_v22 = vsub.f32 %v1164_v40, %v1170_v63 }
 0x444   : > { %v1173_v0 = vpop.xlane.xlu1 %1172 }
 0x445   : > { %v1184_v27 = vmul.f32 1.442695, %v1180_v22  ;;  %v1181_v38 = vsub.f32 %v2604_v45, %v1173_v0 }
 0x446   : > { %v1176_v1 = vpop.xlane.xlu0 %1175 }
 0x447   : > { %v1182_v19 = vsub.f32 %v1166_v46, %v1176_v1  ;;  %v1186_v40 = vmul.f32 1.442695, %v1181_v38 }
 0x448   : > { %v987_v2 = vpop.xlane.xlu1 %986 }
 0x449   : > { %v995_v7 = vsub.f32 %v979_v49, %v987_v2  ;;  %v1188_v23 = vmul.f32 1.442695, %v1182_v19 }
 0x44a   : > { %v1179_v3 = vpop.xlane.xlu0 %1178 }
 0x44b   : > { %v1000_v12 = vmul.f32 1.442695, %v995_v7  ;;  %v1183_v37 = vsub.f32 %v2612_v53, %v1179_v3 }
 0x44c   : > { %v993_v8 = vpop.xlane.xlu1 %992 }
 0x44d   : > { %v997_v10 = vsub.f32 %v981_v55, %v993_v8  ;;  %v1190_v39 = vmul.f32 1.442695, %v1183_v37 }
 0x44e   : > { %v984_v11 = vpop.xlane.xlu0 %983 }
 0x44f   : > { %v1004_v13 = vmul.f32 1.442695, %v997_v10  ;;  %v994_v14 = vsub.f32 %v978_v58, %v984_v11 }
 0x451   : > { %2283 = vpow2.f32 %v1004_v13  ;;  %v998_v20 = vmul.f32 1.442695, %v994_v14 }
 0x452   : > { %v990_v17 = vpop.xlane.xlu0 %989  ;;  %2285 = vpow2.f32 %v1000_v12 }
 0x453   : > { %v996_v18 = vsub.f32 %v980_v61, %v990_v17  ;;  %v2263_v17 = vld [vmem:[%s2481_s17 + $0x8] sm:$0xff]  }
 0x455   : > { %v1002_v21 = vmul.f32 1.442695, %v996_v18  ;;  %v2264_v18 = vld [vmem:[%s2481_s17] sm:$0xff]   ;;  %s2813_s17 = sld [smem:[#allocation11_spill]] (!%p2094_p5) }
 0x457   : > { %2287 = vpow2.f32 %v1002_v21 }
 0x458   : > { %2289 = vpow2.f32 %v998_v20 }
 0x459   : > { %2291 = vpow2.f32 %v1188_v23 }
 0x45a   : > { %2293 = vpow2.f32 %v1184_v27 }
 0x45b   : > { %v2620_v24 = vpop.eup %2283  ;;  %2295 = vpow2.f32 %v1190_v39 }
 0x45c   : > { %v1015_v25 = vsel %vm746_vm0, %v2620_v24, 0.0  ;;  %v2286_v26 = vpop.eup %2285  ;;  %2297 = vpow2.f32 %v1186_v40 }
 0x45d   : > { %1016 = vadd.xlane.f32.xlu1 %v1015_v25  ;;  %v1009_v28 = vsel %vm746_vm0, %v2286_v26, 0.0 }
 0x461   : > { %v2625_v29 = vpop.eup %2287  ;;  %1010 = vadd.xlane.f32.xlu1 %v1009_v28 }
 0x462   : > { %v1012_v30 = vsel %vm746_vm0, %v2625_v29, 0.0  ;;  %v2290_v31 = vpop.eup %2289 }
 0x463   : > { %1013 = vadd.xlane.f32.xlu0 %v1012_v30  ;;  %v1006_v32 = vsel %vm746_vm0, %v2290_v31, 0.0  ;;  %v2630_v33 = vpop.eup %2291 }
 0x464   : > { %v1198_v34 = vsel %vm746_vm0, %v2630_v33, 0.0  ;;  %v2634_v35 = vpop.eup %2293 }
 0x465   : > { %v1192_v36 = vsel %vm746_vm0, %v2634_v35, 0.0  ;;  %v2296_v41 = vpop.eup %2295 }
 0x466   : > { %v1201_v42 = vsel %vm746_vm0, %v2296_v41, 0.0  ;;  %v2298_v43 = vpop.eup %2297 }
 0x467   : > { %1007 = vadd.xlane.f32.xlu0 %v1006_v32  ;;  %v1195_v44 = vsel %vm746_vm0, %v2298_v43, 0.0  ;;  %v2077_v32 = vld [vmem:[%s2810_s6] ss:$0 sm:$0xff] }
 0x46b   : > { %1199 = vadd.xlane.f32.xlu0 %v1198_v34 }
 0x46f   : > { %1193 = vadd.xlane.f32.xlu0 %v1192_v36 }
 0x472   : > { %1216 = vrot.lane.b32.xlu1 %v2570_v15, %s2354_s28 }
 0x485   : > { %1214 = vrot.lane.b32.xlu0 %v2572_v16, %s2354_s28 }
 0x496   : > { %1202 = vadd.xlane.f32.xlu1 %v1201_v42 }
 0x49a   : > { %1196 = vadd.xlane.f32.xlu1 %v1195_v44 }
 0x4ab   : > { %1028 = vrot.lane.b32.xlu1 %v2572_v16, %s2355_s16 }
 0x4af   : > { %1030 = vrot.lane.b32.xlu1 %v2570_v15, %s2355_s16 }
 0x4ea   : > { %v1017_v45 = vpop.xlane.xlu1 %1016 }
 0x4ee   : > { %v1011_v46 = vpop.xlane.xlu1 %1010 }
 0x4ef   : > { %2299 = vrcp.f32 %v1011_v46 }
 0x4f0   : > { %v1014_v47 = vpop.xlane.xlu0 %1013 }
 0x4f2   : > { %v1217_v56 = vpop.permute.xlu1 %1216 }
 0x4f4   : > { %v1008_v48 = vpop.xlane.xlu0 %1007 }
 0x4f5   : > { %2301 = vrcp.f32 %v1008_v48 }
 0x4f6   : > { %2303 = vrcp.f32 %v1014_v47 }
 0x4f7   : > { %2305 = vrcp.f32 %v1017_v45 }
 0x4f8   : > { %v1200_v49 = vpop.xlane.xlu0 %1199 }
 0x4f9   : > { %v2300_v51 = vpop.eup %2299 }
 0x4fa   : > { %v1023_v55 = vmul.f32 %v2300_v51, %v2286_v26 }
 0x4fc   : > { %v1194_v50 = vpop.xlane.xlu0 %1193 }
 0x4ff   : > { %v2302_v52 = vpop.eup %2301 }
 0x500   : > { %v1215_v53 = vpop.permute.xlu0 %1214  ;;  %v1022_v54 = vmul.f32 %v2302_v52, %v2290_v31  ;;  %v2304_v58 = vpop.eup %2303 }
 0x501   : > { %2184 = vmatprep.subr.bf16.mxu1 %v1215_v53  ;;  %v2306_v60 = vpop.eup %2305  ;;  %v1024_v61 = vmul.f32 %v2304_v58, %v2625_v29 }
 0x502   : > { %2185 = vmatpush3.bf16.msra.mxu1 %v1215_v53  ;;  %v1026_v57 = vpack.c.bf16 %v1023_v55, %v1022_v54  ;;  %v1025_v1 = vmul.f32 %v2306_v60, %v2620_v24 }
 0x503   : > { %2186 = vmatprep.subr.bf16.mxu1 %v1217_v56 }
 0x504   : > { %2172 = vmatprep.mubr.msk.bf16.mxu0 %vm746_vm0, %v1026_v57  ;;  %v1027_v8 = vpack.c.bf16 %v1025_v1, %v1024_v61 }
 0x506   : > { %2187 = vmatpush3.bf16.msra.mxu1 %v1217_v56 }
 0x507   : > { %2192 = vmatprep.subr.bf16.mxu1 %v2263_v17 }
 0x523   : > { %v1203_v15 = vpop.xlane.xlu1 %1202 }
 0x524   : > { %2307 = vrcp.f32 %v1203_v15 }
 0x525   : > { %2309 = vrcp.f32 %v1194_v50 }
 0x526   : > { %2311 = vrcp.f32 %v1200_v49 }
 0x527   : > { %v1197_v16 = vpop.xlane.xlu1 %1196 }
 0x528   : > { %2313 = vrcp.f32 %v1197_v16 }
 0x52b   : > { %v1029_v59 = vpop.permute.xlu1 %1028 }
 0x52c   : > { %2168 = vmatprep.subr.bf16.mxu0 %v1029_v59 }
 0x52d   : > { %2169 = vmatpush3.bf16.msra.mxu0 %v1029_v59 }
 0x52e   : > { %v2308_v62 = vpop.eup %2307 }
 0x52f   : > { %v1031_v63 = vpop.permute.xlu1 %1030  ;;  %v2310_v0 = vpop.eup %2309  ;;  %v1211_v7 = vmul.f32 %v2308_v62, %v2296_v41  ;;  %v2265_v62 = vld [vmem:[%s2498_s4] sm:$0xff]  }
 0x530   : > { %2170 = vmatprep.subr.bf16.mxu0 %v1031_v63  ;;  %v2312_v2 = vpop.eup %2311  ;;  %v1208_v10 = vmul.f32 %v2310_v0, %v2634_v35 }
 0x531   : > { %2171 = vmatpush3.bf16.msra.mxu0 %v1031_v63  ;;  %v1210_v12 = vmul.f32 %v2312_v2, %v2630_v33  ;;  %v2266_v63 = vld [vmem:[%s2498_s4 + $0x8] sm:$0xff]   ;;  %s2814_s4 = sld [smem:[#allocation12_spill]] (!%p2094_p5) }
 0x532   : > { %v2314_v3 = vpop.eup %2313  ;;  %2204 = vmatprep.subr.bf16.mxu0 %v2265_v62 }
 0x533   : > { %v1209_v11 = vmul.f32 %v2314_v3, %v2298_v43  ;;  %v1213_v14 = vpack.c.bf16 %v1211_v7, %v1210_v12 }
 0x534   : > { %2173 = vmatmul.mubr.msk.bf16.vlgmr.msra.gmra.mrb[4].mxu0 %vm746_vm0, %v1027_v8 }
 0x535   : > { %v1212_v13 = vpack.c.bf16 %v1209_v11, %v1208_v10  ;;  %2205 = vmatpush3.bf16.msra.mxu0 %v2265_v62 }
 0x536   : > { %2206 = vmatprep.subr.bf16.mxu0 %v2266_v63 }
 0x537   : > { %2188 = vmatprep.mubr.msk.bf16.mxu1 %vm746_vm0, %v1212_v13 }
 0x538   : > { %2189 = vmatmul.mubr.msk.bf16.vlgmr.msra.gmra.mrb[8].mxu1 %vm746_vm0, %v1213_v14 }
 0x539   : > { %2193 = vmatpush3.bf16.msra.mxu1 %v2263_v17  ;;  %2207 = vmatpush3.bf16.msra.mxu0 %v2266_v63 }
 0x53a   : > { %2198 = vmatprep.subr.bf16.mxu1 %v2264_v18 }
 0x607   : > { %v2174_v19 = vpop.f32.mrb[4].mxu0 }
 0x608   : > { %v1074_v20 = vpop.f32.mrb[5].mxu0 }
 0x609   : > { %v2175_v21 = vpop.f32.mrb[6].mxu0 }
 0x60a   : > { %v1090_v22 = vpack.c.bf16 %v2175_v21, %v2174_v19  ;;  %v1077_v23 = vpop.f32.mrb[7].mxu0  ;;  %v2078_v19 = vld [vmem:[%s660_s14] ss:$0 sm:$0xff] }
 0x60b   : > { %v1089_v24 = vpack.c.bf16 %v1077_v23, %v1074_v20  ;;  %v2190_v25 = vpop.f32.mrb[8].mxu1 }
 0x60c   : > { %v1260_v26 = vpop.f32.mrb[9].mxu1 }
 0x60d   : > { %v2191_v27 = vpop.f32.mrb[10].mxu1 }
 0x60e   : > { %v1276_v28 = vpack.c.bf16 %v2191_v27, %v2190_v25  ;;  %v1263_v29 = vpop.f32.mrb[11].mxu1  ;;  %v2079_v25 = vld [vmem:[%s663_s21] ss:$0 sm:$0xff] }
 0x60f   : > { %v1275_v30 = vpack.c.bf16 %v1263_v29, %v1260_v26 }
 0x611   : > { %2194 = vmatprep.mubr.msk.bf16.mxu1 %vm912_vm1, %v1275_v30 }
 0x612   : > { %2195 = vmatmul.mubr.msk.bf16.vlgmr.msra.gmra.mrb[12].mxu1 %vm912_vm1, %v1276_v28 }
 0x613   : > { %2199 = vmatpush3.bf16.msra.mxu1 %v2264_v18  ;;  %2200 = vmatprep.mubr.msk.bf16.mxu1 %vm912_vm1, %v1089_v24 }
 0x61e   : > { %2201 = vmatmul.mubr.msk.bf16.vlgmr.msra.gmra.mrb[12].mxu1 %vm912_vm1, %v1090_v22 }
 0x6f1   : > { %v2202_v31 = vpop.f32.mrb[12].mxu1 }
 0x6f2   : > { %v1384_v33 = vpop.f32.mrb[13].mxu1  ;;  %v1401_v34 = vadd.f32 %v2202_v31, %v2529_v5 }
 0x6f3   : > { %v1399_v35 = vadd.f32 %v1384_v33, %v2527_v4  ;;  %v2203_v36 = vpop.f32.mrb[14].mxu1 }
 0x6f4   : > { %v1387_v37 = vpop.f32.mrb[15].mxu1  ;;  %v2670_v40 = vadd.f32 %v2077_v32, %v1401_v34  ;;  %v1402_v41 = vadd.f32 %v2203_v36, %v2537_v9 }
 0x6f5   : > { %v2667_v38 = vadd.f32 %v2077_v32, %v1399_v35  ;;  %v1400_v39 = vadd.f32 %v1387_v37, %v2531_v6 }
 0x6f6   : > { %v2679_v4 = vadd.f32 %v2077_v32, %v1402_v41  ;;  %v1422_v44 = vsel %vm746_vm0, %v2670_v40, 0.0  ;;  %v2268_v41 = vld [vmem:[%s2508_s0 + $0x8] sm:$0xff]  }
 0x6f7   : > { %v2673_v42 = vadd.f32 %v2077_v32, %v1400_v39  ;;  %v1416_v43 = vsel %vm746_vm0, %v2667_v38, 0.0  ;;  %v2267_v39 = vld [vmem:[%s2508_s0] sm:$0xff]  }
 0x6f8   : > { %1417 = vadd.xlane.f32.xlu0 %v1416_v43  ;;  %v1425_v6 = vsel %vm746_vm0, %v2679_v4, 0.0  ;;  %2212 = vmatprep.subr.bf16.mxu0 %v2267_v39  ;;  %v2269_v43 = vld [vmem:[%s2508_s0 + $0x10] sm:$0xff]  }
 0x6f9   : > { %v1419_v5 = vsel %vm746_vm0, %v2673_v42, 0.0 }
 0x6fa   : > { %1420 = vadd.xlane.f32.xlu1 %v1419_v5  ;;  %v2270_v5 = vld [vmem:[%s2508_s0 + $0x18] sm:$0xff]  }
 0x6fc   : > { %1423 = vadd.xlane.f32.xlu0 %v1422_v44  ;;  %v2271_v44 = vld [vmem:[%s2508_s0 + $0x20] sm:$0xff]  }
 0x700   : > { %1426 = vadd.xlane.f32.xlu0 %v1425_v6  ;;  %v2272_v6 = vld [vmem:[%s2508_s0 + $0x28] sm:$0xff]  }
 0x785   : > { %v1418_v9 = vpop.xlane.xlu0 %1417 }
 0x786   : > { %v1428_v45 = vmul.f32 0.03125, %v1418_v9  ;;  %v2273_v9 = vld [vmem:[%s2508_s0 + $0x30] sm:$0xff]  }
 0x787   : > { %v1421_v46 = vpop.xlane.xlu1 %1420 }
 0x788   : > { %v1432_v47 = vsub.f32 %v2667_v38, %v1428_v45  ;;  %v1429_v48 = vmul.f32 0.03125, %v1421_v46  ;;  %v2274_v45 = vld [vmem:[%s2508_s0 + $0x38] sm:$0xff]   ;;  %v2080_v46 = vld [vmem:[%s2811_s20] ss:$0 sm:$0xff] }
 0x789   : > { %v1424_v49 = vpop.xlane.xlu0 %1423 }
 0x78a   : > { %v1433_v50 = vsub.f32 %v2673_v42, %v1429_v48  ;;  %v1430_v51 = vmul.f32 0.03125, %v1424_v49  ;;  %v1436_v52 = vmul.f32 %v1432_v47, %v1432_v47 }
 0x78c   : > { %v1434_v53 = vsub.f32 %v2670_v40, %v1430_v51  ;;  %v1440_v54 = vsel %vm746_vm0, %v1436_v52, 0.0  ;;  %v1437_v55 = vmul.f32 %v1433_v50, %v1433_v50 }
 0x78d   : > { %1441 = vadd.xlane.f32.xlu0 %v1440_v54  ;;  %v1427_v56 = vpop.xlane.xlu0 %1426 }
 0x78e   : > { %v1431_v57 = vmul.f32 0.03125, %v1427_v56  ;;  %v1443_v15 = vsel %vm746_vm0, %v1437_v55, 0.0  ;;  %v1438_v16 = vmul.f32 %v1434_v53, %v1434_v53 }
 0x78f   : > { %1444 = vadd.xlane.f32.xlu1 %v1443_v15 }
 0x790   : > { %v1435_v58 = vsub.f32 %v2679_v4, %v1431_v57  ;;  %v1446_v59 = vsel %vm746_vm0, %v1438_v16, 0.0 }
 0x791   : > { %1447 = vadd.xlane.f32.xlu0 %v1446_v59 }
 0x792   : > { %v1439_v60 = vmul.f32 %v1435_v58, %v1435_v58 }
 0x794   : > { %v1449_v61 = vsel %vm746_vm0, %v1439_v60, 0.0 }
 0x795   : > { %1450 = vadd.xlane.f32.xlu1 %v1449_v61 }
 0x81a   : > { %v1442_v0 = vpop.xlane.xlu0 %1441 }
 0x81b   : > { %v1452_v1 = vmul.f32 0.03125, %v1442_v0 }
 0x81c   : > { %v1445_v2 = vpop.xlane.xlu1 %1444 }
 0x81d   : > { %v1456_v3 = vadd.f32 1e-05, %v1452_v1  ;;  %v1453_v7 = vmul.f32 0.03125, %v1445_v2 }
 0x81e   : > { %v1448_v8 = vpop.xlane.xlu0 %1447 }
 0x81f   : > { %2315 = vrsqrt.f32 %v1456_v3  ;;  %v1457_v10 = vadd.f32 1e-05, %v1453_v7  ;;  %v1454_v11 = vmul.f32 0.03125, %v1448_v8 }
 0x821   : > { %2317 = vrsqrt.f32 %v1457_v10  ;;  %v1458_v12 = vadd.f32 1e-05, %v1454_v11 }
 0x822   : > { %v1451_v13 = vpop.xlane.xlu1 %1450 }
 0x823   : > { %2319 = vrsqrt.f32 %v1458_v12  ;;  %v1455_v14 = vmul.f32 0.03125, %v1451_v13 }
 0x825   : > { %v1459_v17 = vadd.f32 1e-05, %v1455_v14 }
 0x827   : > { %2321 = vrsqrt.f32 %v1459_v17 }
 0x829   : > { %v2316_v18 = vpop.eup %2315 }
 0x82a   : > { %v1464_v20 = vmul.f32 %v2316_v18, %v1432_v47 }
 0x82b   : > { %v2318_v21 = vpop.eup %2317 }
 0x82c   : > { %v1465_v22 = vmul.f32 %v2318_v21, %v1433_v50  ;;  %v1474_v23 = vmul.f32 %v2078_v19, %v1464_v20 }
 0x82d   : > { %v2320_v24 = vpop.eup %2319 }
 0x82e   : > { %v1466_v26 = vmul.f32 %v2320_v24, %v1434_v53  ;;  %v1475_v27 = vmul.f32 %v2078_v19, %v1465_v22  ;;  %v1484_v28 = vadd.f32 %v2079_v25, %v1474_v23 }
 0x830   : > { %v1485_v29 = vadd.f32 %v2079_v25, %v1475_v27  ;;  %v1476_v31 = vmul.f32 %v2078_v19, %v1466_v26 }
 0x831   : > { %v2322_v30 = vpop.eup %2321 }
 0x832   : > { %v1467_v32 = vmul.f32 %v2322_v30, %v1435_v58  ;;  %v1492_v33 = vpack.c.bf16 %v1485_v29, %v1484_v28  ;;  %v1486_v35 = vadd.f32 %v2079_v25, %v1476_v31 }
 0x834   : > { %v1477_v34 = vmul.f32 %v2078_v19, %v1467_v32  ;;  %2208 = vmatprep.mubr.msk.bf16.mxu0 %vm746_vm0, %v1492_v33 }
 0x836   : > { %v1487_v36 = vadd.f32 %v2079_v25, %v1477_v34  ;;  %v2093_v34 = vld [vmem:[%s679_s1] ss:$0 sm:$0xff]  ;;  %s2812_s1 = sld [smem:[#allocation13_spill]] (!%p2094_p5) }
 0x838   : > { %v1493_v37 = vpack.c.bf16 %v1487_v36, %v1486_v35 }
 0x83a   : > { %2209 = vmatmul.mubr.msk.bf16.vlgmr.msra.gmra.mrb[8].mxu0 %vm746_vm0, %v1493_v37 }
 0x83b   : > { %2213 = vmatpush3.bf16.msra.mxu0 %v2267_v39 }
 0x83c   : > { %2214 = vmatprep.subr.bf16.mxu0 %v2268_v41 }
 0x83f   : > { %2215 = vmatpush3.bf16.msra.mxu0 %v2268_v41 }
 0x840   : > { %2216 = vmatprep.subr.bf16.mxu0 %v2269_v43 }
 0x843   : > { %2217 = vmatpush3.bf16.msra.mxu0 %v2269_v43 }
 0x844   : > { %2218 = vmatprep.subr.bf16.mxu0 %v2270_v5 }
 0x847   : > { %2219 = vmatpush3.bf16.msra.mxu0 %v2270_v5 }
 0x848   : > { %2220 = vmatprep.subr.bf16.mxu0 %v2271_v44 }
 0x84b   : > { %2221 = vmatpush3.bf16.msra.mxu0 %v2271_v44 }
 0x84c   : > { %2222 = vmatprep.subr.bf16.mxu0 %v2272_v6 }
 0x84f   : > { %2223 = vmatpush3.bf16.msra.mxu0 %v2272_v6 }
 0x850   : > { %2224 = vmatprep.subr.bf16.mxu0 %v2273_v9 }
 0x853   : > { %2225 = vmatpush3.bf16.msra.mxu0 %v2273_v9 }
 0x854   : > { %2226 = vmatprep.subr.bf16.mxu0 %v2274_v45 }
 0x857   : > { %2227 = vmatpush3.bf16.msra.mxu0 %v2274_v45 }
 0x90d   : > { %v2210_v47 = vpop.f32.mrb[8].mxu0 }
 0x90e   : > { %v1562_v48 = vadd.f32 %v2210_v47, %v2080_v46  ;;  %v1553_v49 = vpop.f32.mrb[9].mxu0 }
 0x90f   : > { %v1554_v50 = vadd.f32 %v2080_v46, %v1553_v49  ;;  %v2211_v51 = vpop.f32.mrb[10].mxu0 }
 0x910   : > { %v1574_v52 = vmul.f32 0.044715, %v1562_v48  ;;  %v1565_v53 = vadd.f32 %v2211_v51, %v2080_v46  ;;  %v1556_v54 = vpop.f32.mrb[11].mxu0  ;;  %v1570_v21 = vmul.f32 0.5, %v1562_v48 }
 0x911   : > { %v1572_v55 = vmul.f32 0.044715, %v1554_v50  ;;  %v1557_v56 = vadd.f32 %v2080_v46, %v1556_v54  ;;  %v1568_v24 = vmul.f32 0.5, %v1554_v50 }
 0x912   : > { %v1578_v57 = vmul.f32 %v1574_v52, %v1562_v48  ;;  %v1575_v15 = vmul.f32 0.044715, %v1565_v53  ;;  %v1571_v22 = vmul.f32 0.5, %v1565_v53 }
 0x913   : > { %v1576_v16 = vmul.f32 %v1572_v55, %v1554_v50  ;;  %v1573_v58 = vmul.f32 0.044715, %v1557_v56  ;;  %v1569_v25 = vmul.f32 0.5, %v1557_v56 }
 0x914   : > { %v1582_v59 = vmul.f32 %v1578_v57, %v1562_v48  ;;  %v1579_v60 = vmul.f32 %v1575_v15, %v1565_v53 }
 0x915   : > { %v1580_v61 = vmul.f32 %v1576_v16, %v1554_v50  ;;  %v1577_v62 = vmul.f32 %v1573_v58, %v1557_v56 }
 0x916   : > { %v1586_v63 = vadd.f32 %v1582_v59, %v1562_v48  ;;  %v1583_v0 = vmul.f32 %v1579_v60, %v1565_v53 }
 0x917   : > { %v1581_v1 = vmul.f32 %v1577_v62, %v1557_v56  ;;  %v1584_v2 = vadd.f32 %v1580_v61, %v1554_v50 }
 0x918   : > { %v1590_v3 = vmul.f32 0.7978846, %v1586_v63  ;;  %v1587_v7 = vadd.f32 %v1583_v0, %v1565_v53  ;;  %v2331_v0 = vld [vmem:[%s2812_s1] sm:$0xff] (!%p2094_p5)  }
 0x919   : > { %v1585_v8 = vadd.f32 %v1581_v1, %v1557_v56  ;;  %v1588_v10 = vmul.f32 0.7978846, %v1584_v2  ;;  %v2332_v1 = vld [vmem:[%s2812_s1 + $0x8] sm:$0xff] (!%p2094_p5)   ;;  %2232 = vmatprep.subr.bf16.mxu0 (!%p2094_p5), %v2331_v0 }
 0x91a   : > { %2323 = vtanh.f32 %v1590_v3  ;;  %v1591_v11 = vmul.f32 0.7978846, %v1587_v7 }
 0x91b   : > { %v1589_v12 = vmul.f32 0.7978846, %v1585_v8  ;;  %2325 = vtanh.f32 %v1588_v10 }
 0x91c   : > { %2327 = vtanh.f32 %v1591_v11 }
 0x91d   : > { %2329 = vtanh.f32 %v1589_v12 }
 0x924   : > { %v2324_v13 = vpop.eup %2323 }
 0x925   : > { %v2326_v14 = vpop.eup %2325  ;;  %v1598_v17 = vadd.f32 1.0, %v2324_v13 }
 0x926   : > { %v2328_v18 = vpop.eup %2327  ;;  %v1596_v19 = vadd.f32 1.0, %v2326_v14 }
 0x927   : > { %v2330_v20 = vpop.eup %2329  ;;  %v1599_v23 = vadd.f32 1.0, %v2328_v18  ;;  %v1602_v27 = vmul.f32 %v1598_v17, %v1570_v21 }
 0x928   : > { %v1597_v26 = vadd.f32 1.0, %v2330_v20  ;;  %v1600_v29 = vmul.f32 %v1596_v19, %v1568_v24 }
 0x929   : > { %v1603_v28 = vmul.f32 %v1599_v23, %v1571_v22  ;;  %v2095_v22 = vld [vmem:[%s2813_s17] ss:$0 sm:$0xff] (!%p2094_p5) }
 0x92a   : > { %v1601_v30 = vmul.f32 %v1597_v26, %v1569_v25 }
 0x92b   : > { %v1621_v31 = vpack.c.bf16 %v1603_v28, %v1602_v27  ;;  %v2096_v27 = vld [vmem:[%s2814_s4] ss:$0 sm:$0xff] (!%p2094_p5) }
 0x92c   : > { %v1620_v32 = vpack.c.bf16 %v1601_v30, %v1600_v29 }
 0x92e   : > { %2228 = vmatprep.mubr.bf16.mxu0 %v1620_v32 }
 0x92f   : > { %2229 = vmatmul.mubr.bf16.vlgmr.msra.gmra.mrb[12].mxu0 %v1621_v31 }
 0x930   : > { %2233 = vmatpush3.bf16.msra.mxu0 (!%p2094_p5), %v2331_v0 }
 0x931   : > { %2234 = vmatprep.subr.bf16.mxu0 (!%p2094_p5), %v2332_v1 }
 0x934   : > { %2235 = vmatpush3.bf16.msra.mxu0 (!%p2094_p5), %v2332_v1 }
 0xa02   : > { %v2230_v33 = vpop.f32.mrb[12].mxu0 }
 0xa03   : > { %v1721_v35 = vadd.f32 %v2230_v33, %v2670_v40  ;;  %v1704_v36 = vpop.f32.mrb[13].mxu0 }
 0xa04   : > { %v1719_v37 = vadd.f32 %v1704_v36, %v2667_v38  ;;  %v2231_v39 = vpop.f32.mrb[14].mxu0  ;;  %1741 = sbr.rel (%p2094_p5) target bundleno = 3107 (0xc23), region = 126 }
 0xa05   : > { %v1732_v41 = vadd.f32 %v2093_v34, %v1721_v35  ;;  %v1722_v43 = vadd.f32 %v2231_v39, %v2679_v4  ;;  %v1707_v5 = vpop.f32.mrb[15].mxu0 }
 0xa06   : > { %v1730_v44 = vadd.f32 %v2093_v34, %v1719_v37  ;;  %v1720_v6 = vadd.f32 %v1707_v5, %v2673_v42 }
 0xa07   : > { %1736 = vst.msk [vmem:[#allocation2 + $0x10] sm:$0xff] %vm746_vm0, %v1732_v41  ;;  %v1733_v9 = vadd.f32 %v2093_v34, %v1722_v43  ;;  %v1750_v40 = vsel (!%p2094_p5), %vm746_vm0, %v1732_v41, 0.0 }
 0xa08   : > { %1734 = vst.msk [vmem:[#allocation2] sm:$0xff] %vm746_vm0, %v1730_v44  ;;  %v1731_v45 = vadd.f32 %v2093_v34, %v1720_v6  ;;  %v1744_v38 = vsel (!%p2094_p5), %vm746_vm0, %v1730_v44, 0.0  ;;  %1751 = vadd.xlane.f32.xlu1 (!%p2094_p5), %v1750_v40 }
 0xa09   : > { %1737 = vst.msk [vmem:[#allocation2 + $0x18] sm:$0xff] %vm746_vm0, %v1733_v9  ;;  %1745 = vadd.xlane.f32.xlu0 (!%p2094_p5), %v1744_v38  ;;  %v1753_v4 = vsel (!%p2094_p5), %vm746_vm0, %v1733_v9, 0.0 }
 0xa0a   : > { %1735 = vst.msk [vmem:[#allocation2 + $0x8] sm:$0xff] %vm746_vm0, %v1731_v45  ;;  %v1747_v42 = vsel (!%p2094_p5), %vm746_vm0, %v1731_v45, 0.0 }
 0xa0c   : > { %1754 = vadd.xlane.f32.xlu1 %v1753_v4 }
 0xa0d   : > { %1748 = vadd.xlane.f32.xlu0 %v1747_v42 }
 0xa95   : > { %v1752_v47 = vpop.xlane.xlu1 %1751 }
 0xa96   : > { %v1746_v46 = vpop.xlane.xlu0 %1745  ;;  %v1758_v49 = vmul.f32 0.03125, %v1752_v47 }
 0xa97   : > { %v1756_v48 = vmul.f32 0.03125, %v1746_v46 }
 0xa98   : > { %v1762_v51 = vsub.f32 %v1732_v41, %v1758_v49 }
 0xa99   : > { %v1760_v50 = vsub.f32 %v1730_v44, %v1756_v48  ;;  %v1755_v53 = vpop.xlane.xlu1 %1754 }
 0xa9a   : > { %v1749_v52 = vpop.xlane.xlu0 %1748  ;;  %v1759_v55 = vmul.f32 0.03125, %v1755_v53  ;;  %v1766_v57 = vmul.f32 %v1762_v51, %v1762_v51 }
 0xa9b   : > { %v1757_v54 = vmul.f32 0.03125, %v1749_v52  ;;  %v1764_v56 = vmul.f32 %v1760_v50, %v1760_v50 }
 0xa9c   : > { %v1763_v16 = vsub.f32 %v1733_v9, %v1759_v55  ;;  %v1774_v59 = vsel %vm746_vm0, %v1766_v57, 0.0 }
 0xa9d   : > { %v1761_v15 = vsub.f32 %v1731_v45, %v1757_v54  ;;  %v1768_v58 = vsel %vm746_vm0, %v1764_v56, 0.0 }
 0xa9e   : > { %1769 = vadd.xlane.f32.xlu0 %v1768_v58  ;;  %v1767_v61 = vmul.f32 %v1763_v16, %v1763_v16 }
 0xa9f   : > { %v1765_v60 = vmul.f32 %v1761_v15, %v1761_v15 }
 0xaa0   : > { %v1777_v63 = vsel %vm746_vm0, %v1767_v61, 0.0 }
 0xaa1   : > { %v1771_v62 = vsel %vm746_vm0, %v1765_v60, 0.0 }
 0xaa2   : > { %1775 = vadd.xlane.f32.xlu0 %v1774_v59  ;;  %1772 = vadd.xlane.f32.xlu1 %v1771_v62 }
 0xaa6   : > { %1778 = vadd.xlane.f32.xlu1 %v1777_v63 }
 0xb2b   : > { %v1770_v2 = vpop.xlane.xlu0 %1769 }
 0xb2c   : > { %v1780_v3 = vmul.f32 0.03125, %v1770_v2 }
 0xb2e   : > { %v1784_v7 = vadd.f32 1e-05, %v1780_v3 }
 0xb2f   : > { %v1773_v8 = vpop.xlane.xlu1 %1772  ;;  %v1776_v10 = vpop.xlane.xlu0 %1775 }
 0xb30   : > { %2333 = vrsqrt.f32 %v1784_v7  ;;  %v1781_v11 = vmul.f32 0.03125, %v1773_v8  ;;  %v1782_v12 = vmul.f32 0.03125, %v1776_v10 }
 0xb32   : > { %v1785_v13 = vadd.f32 1e-05, %v1781_v11  ;;  %v1786_v14 = vadd.f32 1e-05, %v1782_v12 }
 0xb33   : > { %v1779_v17 = vpop.xlane.xlu1 %1778 }
 0xb34   : > { %2335 = vrsqrt.f32 %v1785_v13  ;;  %v1783_v18 = vmul.f32 0.03125, %v1779_v17 }
 0xb35   : > { %2337 = vrsqrt.f32 %v1786_v14 }
 0xb36   : > { %v1787_v19 = vadd.f32 1e-05, %v1783_v18 }
 0xb38   : > { %2339 = vrsqrt.f32 %v1787_v19 }
 0xb3a   : > { %v2334_v20 = vpop.eup %2333 }
 0xb3b   : > { %v1792_v21 = vmul.f32 %v2334_v20, %v1760_v50 }
 0xb3d   : > { %v1802_v26 = vmul.f32 %v2095_v22, %v1792_v21 }
 0xb3e   : > { %v2336_v23 = vpop.eup %2335 }
 0xb3f   : > { %v2338_v24 = vpop.eup %2337  ;;  %v1793_v25 = vmul.f32 %v2336_v23, %v1761_v15  ;;  %v1812_v31 = vadd.f32 %v2096_v27, %v1802_v26 }
 0xb40   : > { %v1794_v28 = vmul.f32 %v2338_v24, %v1762_v51 }
 0xb41   : > { %v1803_v29 = vmul.f32 %v2095_v22, %v1793_v25 }
 0xb42   : > { %v2340_v30 = vpop.eup %2339  ;;  %v1804_v34 = vmul.f32 %v2095_v22, %v1794_v28 }
 0xb43   : > { %v1813_v32 = vadd.f32 %v2096_v27, %v1803_v29  ;;  %v1795_v33 = vmul.f32 %v2340_v30, %v1763_v16 }
 0xb44   : > { %v1814_v37 = vadd.f32 %v2096_v27, %v1804_v34 }
 0xb45   : > { %v1820_v35 = vpack.c.bf16 %v1813_v32, %v1812_v31  ;;  %v1805_v36 = vmul.f32 %v2095_v22, %v1795_v33 }
 0xb47   : > { %2236 = vmatprep.mubr.msk.bf16.mxu0 %vm746_vm0, %v1820_v35  ;;  %v1815_v39 = vadd.f32 %v2096_v27, %v1805_v36 }
 0xb49   : > { %v1821_v41 = vpack.c.bf16 %v1815_v39, %v1814_v37 }
 0xb4b   : > { %2237 = vmatmul.mubr.msk.bf16.vlgmr.msra.gmra.mrb[0].mxu0 %vm746_vm0, %v1821_v41 }
 0xc1e   : > { %v2238_v43 = vpop.f32.mrb[0].mxu0 }
 0xc1f   : > { %1891 = vst [vmem:[%s2815_s30 + $0x10] sm:$0xff] %v2238_v43  ;;  %v1874_v5 = vpop.f32.mrb[1].mxu0 }
 0xc20   : > { %1889 = vst [vmem:[%s2815_s30] sm:$0xff] %v1874_v5  ;;  %v2239_v44 = vpop.f32.mrb[2].mxu0 }
 0xc21   : > { %1892 = vst [vmem:[%s2815_s30 + $0x18] sm:$0xff] %v2239_v44  ;;  %v1877_v6 = vpop.f32.mrb[3].mxu0 }
 0xc22   : > { %1890 = vst [vmem:[%s2815_s30 + $0x8] sm:$0xff] %v1877_v6 }
 0xc23 PF: > { %s2816_s26 = sld [smem:[#allocation6_spill]] }
 0xc29   : > { %s27_s24 = sadd.s32 1, %s2816_s26  }
 0xc2a   : > { %p24_p6 = scmp.ge.s32.totalorder %s27_s24, 4  }
 0xc2c   :  { %26 = sbr.rel (!%p24_p6) target bundleno = 9 (0x9), region = 193 }
 0xc33   :  { %1904 = vsyncmov [#allocation3] }
 0xc36   :  { %s1905_s23 = vpop.sfrf %1904 }
 0xc37   :  { %p2103_p7 = scmp.ne.s32.totalorder %s1905_s23, 0 }
 0xc39   :  { %1909 = shalt.err (%p2103_p7)  }

</bundles_post_ra>
